<compile_context>
chip_gen: v7x
topology: tpu7x:2x2x1
jax: 0.10.0
libtpu: 0.0.40
codegen_flags: <defaults>
</compile_context>

<pallas_src>
import functools

import jax
import jax.numpy as jnp
from jax import lax
from jax.experimental import pallas as pl
from jax.experimental.pallas import tpu as pltpu

EPS = 1e-6
_FAST_PATH_MAX_NPAD = 512    # padded-N threshold for the single-block path


def _round_up(x, m):
    return ((x + m - 1) // m) * m


def _normalize_bf16(x):
    # Row-wise L2 norm (dim=1, keepdim=True) + NaN -> 0, matching the PyTorch
    # reference (feat / (norm + eps); feat[feat != feat] = 0), then bf16 for
    # the MXU (approved precision trade-off).
    x = x.astype(jnp.float32)
    nrm = jnp.sqrt(jnp.sum(x * x, axis=1, keepdims=True))
    y = x / (nrm + EPS)
    return jnp.where(jnp.isnan(y), 0.0, y).astype(jnp.bfloat16)


# ----------------------------------------------------------------------------
# Fast path: whole problem in one block (padded N <= 512).
# ----------------------------------------------------------------------------
def _pkt_single_kernel(s_ref, t_ref, out_ref, *, n_valid):
    dims = (((1,), (1,)), ((), ()))                     # A @ B.T, no transpose
    s_cos = lax.dot_general(s_ref[...], s_ref[...], dims,
                            preferred_element_type=jnp.float32)
    t_cos = lax.dot_general(t_ref[...], t_ref[...], dims,
                            preferred_element_type=jnp.float32)
    n_pad = s_cos.shape[1]

    s01 = (s_cos + 1.0) * 0.5
    t01 = (t_cos + 1.0) * 0.5
    if n_valid < n_pad:                                  # static branch
        ok = lax.broadcasted_iota(jnp.int32, (1, n_pad), 1) < n_valid
        s01 = jnp.where(ok, s01, 0.0)
        t01 = jnp.where(ok, t01, 0.0)
    # Padded rows self-cancel exactly (s_prob == t_prob), no row mask needed.

    s_prob = s01 * pl.reciprocal(jnp.sum(s01, axis=1, keepdims=True))
    t_prob = t01 * pl.reciprocal(jnp.sum(t01, axis=1, keepdims=True))
    kl = t_prob * (jnp.log(t_prob + EPS) - jnp.log(s_prob + EPS))
    out_ref[...] = jnp.full(out_ref.shape, jnp.sum(kl), out_ref.dtype)


# ----------------------------------------------------------------------------
# Tiled path: resident row block, streamed column blocks, cached cos stripes,
# KL epilogue on the last column step.
# ----------------------------------------------------------------------------
def _pkt_tiled_kernel(s_row_ref, t_row_ref, s_col_ref, t_col_ref, out_ref,
                      s_cache, t_cache, s_rsum, t_rsum,
                      *, n_valid, tile_c, nj):
    j = pl.program_id(1)

    @pl.when(j == 0)
    def _():
        s_rsum[...] = jnp.zeros_like(s_rsum)
        t_rsum[...] = jnp.zeros_like(t_rsum)

    dims = (((1,), (1,)), ((), ()))                     # contract feature dim
    s_cos = lax.dot_general(s_row_ref[...], s_col_ref[...], dims,
                            preferred_element_type=jnp.float32)
    t_cos = lax.dot_general(t_row_ref[...], t_col_ref[...], dims,
                            preferred_element_type=jnp.float32)

    # Raw-cos row sums: padded columns are zero feature vectors so their cos
    # is exactly 0; the (cos+1)/2 offset is added once in the epilogue.
    s_rsum[...] += jnp.sum(s_cos, axis=1, keepdims=True)
    t_rsum[...] += jnp.sum(t_cos, axis=1, keepdims=True)

    # Cache the (cos+1)/2 stripe of this i-tile for the KL epilogue so the
    # matmuls / column DMAs are not repeated (no per-step mask here).
    s_cache[j] = ((s_cos + 1.0) * 0.5).astype(s_cache.dtype)
    t_cache[j] = ((t_cos + 1.0) * 0.5).astype(t_cache.dtype)

    @pl.when(j == nj - 1)
    def _():
        # Padding only ever lives in the last column block: mask it once.
        if n_valid < nj * tile_c:                        # static branch
            col_ids = (nj - 1) * tile_c + lax.broadcasted_iota(
                jnp.int32, (1, tile_c), 1)
            ok = col_ids < n_valid
            s_cache[nj - 1] = jnp.where(
                ok, s_cache[nj - 1], 0.0).astype(s_cache.dtype)
            t_cache[nj - 1] = jnp.where(
                ok, t_cache[nj - 1], 0.0).astype(t_cache.dtype)

        # Row sums of (cos+1)/2 over the n_valid true columns (exact).
        s_inv = pl.reciprocal(0.5 * s_rsum[...] + 0.5 * n_valid)
        t_inv = pl.reciprocal(0.5 * t_rsum[...] + 0.5 * n_valid)

        def body(c, acc):
            s_p = s_cache[c].astype(jnp.float32) * s_inv
            t_p = t_cache[c].astype(jnp.float32) * t_inv
            kl = t_p * (jnp.log(t_p + EPS) - jnp.log(s_p + EPS))
            return acc + jnp.sum(kl, axis=1, keepdims=True)

        kl_rows = lax.fori_loop(0, nj, body,
                                jnp.zeros(s_rsum.shape, jnp.float32))
        # Padded rows contribute exactly 0 (s_prob == t_prob), padded columns
        # exactly 0 (prob == 0), so no further masking is needed.
        out_ref[...] = jnp.full(out_ref.shape, jnp.sum(kl_rows), out_ref.dtype)


# ----------------------------------------------------------------------------
# Wrapper
# ----------------------------------------------------------------------------
@jax.jit
def pkt_cos_sim(feat_s, feat_t):
    """PKT cosine-similarity KL loss. feat_s, feat_t: (N, D). Returns scalar f32."""
    assert feat_s.shape == feat_t.shape and feat_s.ndim == 2
    n, d = feat_s.shape
    d_pad = _round_up(d, 128)

    fast = _round_up(n, 128) <= _FAST_PATH_MAX_NPAD
    if fast:
        n_pad = _round_up(n, 128)                        # lane-dense cos matrix
        tile_r = tile_c = None
    elif _round_up(n, 256) <= 2048:
        tile_r, tile_c = 128, 256                        # ni >= 3 (megacore)
        n_pad = _round_up(n, tile_c)
    else:
        tile_r, tile_c = 256, 512                        # fewer grid steps
        n_pad = _round_up(n, tile_c)

    def prep(x):
        y = _normalize_bf16(x)                           # normalize once, bf16
        return jnp.pad(y, ((0, n_pad - n), (0, d_pad - d)))

    s = prep(feat_s)
    t = prep(feat_t)

    if fast:
        est = (4 * n_pad * d_pad * 2 + 10 * n_pad * n_pad * 4 + (1 << 20))
        vmem_limit = int(min(max(est, 16 << 20), 48 << 20))
        out = pl.pallas_call(
            functools.partial(_pkt_single_kernel, n_valid=n),
            out_shape=jax.ShapeDtypeStruct((8, 128), jnp.float32),
            grid=(1,),
            in_specs=[pl.BlockSpec((n_pad, d_pad), lambda i: (0, 0)),
                      pl.BlockSpec((n_pad, d_pad), lambda i: (0, 0))],
            out_specs=pl.BlockSpec((8, 128), lambda i: (0, 0)),
            compiler_params=pltpu.CompilerParams(vmem_limit_bytes=vmem_limit),
        )(s, t)
        return out[0, 0] * (1.0 / (n * n))

    ni = n_pad // tile_r
    nj = n_pad // tile_c

    # f32 cos-stripe cache when it fits comfortably, else bf16 (v7x budget).
    cache_dtype = (jnp.float32 if 2 * tile_r * n_pad * 4 <= (16 << 20)
                   else jnp.bfloat16)
    cache_bytes = 2 * tile_r * n_pad * jnp.dtype(cache_dtype).itemsize
    est = (cache_bytes
           + 4 * 2 * (tile_r + tile_c) * d_pad * 2       # double-buffered bf16 inputs
           + 10 * tile_r * tile_c * 4                    # matmul / KL temporaries
           + (2 << 20))
    vmem_limit = int(min(max(est, 16 << 20), 32 << 20))  # <= half of v7x VMEM

    row_spec = pl.BlockSpec((tile_r, d_pad), lambda i, j: (i, 0))
    col_spec = pl.BlockSpec((tile_c, d_pad), lambda i, j: (j, 0))

    kernel = functools.partial(_pkt_tiled_kernel, n_valid=n,
                               tile_c=tile_c, nj=nj)
    partials = pl.pallas_call(
        kernel,
        out_shape=jax.ShapeDtypeStruct((ni, 8, 128), jnp.float32),
        grid_spec=pltpu.PrefetchScalarGridSpec(
            num_scalar_prefetch=0,
            grid=(ni, nj),
            in_specs=[row_spec, row_spec, col_spec, col_spec],
            out_specs=pl.BlockSpec((1, 8, 128), lambda i, j: (i, 0, 0)),
            scratch_shapes=[
                pltpu.VMEM((nj, tile_r, tile_c), cache_dtype),  # s cos stripe
                pltpu.VMEM((nj, tile_r, tile_c), cache_dtype),  # t cos stripe
                pltpu.VMEM((tile_r, 1), jnp.float32),           # s raw row sums
                pltpu.VMEM((tile_r, 1), jnp.float32),           # t raw row sums
            ],
        ),
        compiler_params=pltpu.CompilerParams(
            dimension_semantics=("parallel", "arbitrary"),
            vmem_limit_bytes=vmem_limit,
        ),
    )(s, t, s, t)

    # Deferred mean: one scalar multiply over the true (unpadded) N*N.
    return jnp.sum(partials[:, 0, 0]) * (1.0 / (n * n))


# ----------------------------------------------------------------------------
# Pure-JAX reference (PyTorch parity when mxu_dtype=f32; kernel-precision
# parity when mxu_dtype=bf16).
# ----------------------------------------------------------------------------
def _pkt_cos_sim_ref(feat_s, feat_t, mxu_dtype=jnp.float32):
    s = feat_s.astype(jnp.float32)
    t = feat_t.astype(jnp.float32)
    s = s / (jnp.sqrt(jnp.sum(s * s, axis=1, keepdims=True)) + EPS)
    s = jnp.where(jnp.isnan(s), 0.0, s)
    t = t / (jnp.sqrt(jnp.sum(t * t, axis=1, keepdims=True)) + EPS)
    t = jnp.where(jnp.isnan(t), 0.0, t)
    dims = (((1,), (1,)), ((), ()))
    s_cos = lax.dot_general(s.astype(mxu_dtype), s.astype(mxu_dtype), dims,
                            preferred_element_type=jnp.float32)
    t_cos = lax.dot_general(t.astype(mxu_dtype), t.astype(mxu_dtype), dims,
                            preferred_element_type=jnp.float32)
    s_cos = (s_cos + 1.0) / 2.0
    t_cos = (t_cos + 1.0) / 2.0
    s_p = s_cos / jnp.sum(s_cos, axis=1, keepdims=True)
    t_p = t_cos / jnp.sum(t_cos, axis=1, keepdims=True)
    return jnp.mean(t_p * jnp.log((t_p + EPS) / (s_p + EPS)))


if __name__ == "__main__":
    key = jax.random.PRNGKey(0)
    # (200, 96): fast path with row/column padding masks.
    # (64, 48):  fast path, lane floor at 128 for both N and D.
    # (640, 64): tiled path (n_pad=768, ni=6, nj=3) incl. padded last block.
    for (n, d) in ((200, 96), (64, 48), (640, 64)):
        key, ks, kt = jax.random.split(key, 3)
        feat_s = jax.random.normal(ks, (n, d), dtype=jnp.float32)
        feat_t = jax.random.normal(kt, (n, d), dtype=jnp.float32)

        loss = pkt_cos_sim(feat_s, feat_t)
        jax.block_until_ready(loss)

        ref_bf16 = _pkt_cos_sim_ref(feat_s, feat_t, mxu_dtype=jnp.bfloat16)
        ref_f32 = _pkt_cos_sim_ref(feat_s, feat_t, mxu_dtype=jnp.float32)

        # Matched-precision check (same bf16-MXU / f32-accumulate math).
        assert jnp.allclose(loss, ref_bf16, rtol=1e-2, atol=1e-6), (
            n, d, float(loss), float(ref_bf16))
        # Loose check against the full-f32 PyTorch-parity reference
        # (bf16 MXU inputs are an approved precision trade-off).
        assert jnp.allclose(loss, ref_f32, rtol=5e-2, atol=2e-5), (
            n, d, float(loss), float(ref_f32))

    print("KERNEL_OK")
</pallas_src>

<mosaic_0001>
module attributes {stable_mosaic.version = 11 : i64} {
  func.func @_pkt_single_kernel(%arg0: i32, %arg1: memref<256x128xbf16, #tpu.memory_space<vmem>>, %arg2: memref<256x128xbf16, #tpu.memory_space<vmem>>, %arg3: memref<8x128xf32, #tpu.memory_space<vmem>>) attributes {dimension_semantics = [#tpu.dimension_semantics<arbitrary>], iteration_bounds = array<i64: 1>, scalar_prefetch = 0 : i64, scratch_operands = 0 : i64, tpu.core_type = #tpu.core_type<tc>, window_params = [{pipeline_mode = #tpu.pipeline_mode<synchronous>, transform_indices = @transform_0, window_bounds = array<i64: 256, 128>}, {pipeline_mode = #tpu.pipeline_mode<synchronous>, transform_indices = @transform_1, window_bounds = array<i64: 256, 128>}, {pipeline_mode = #tpu.pipeline_mode<synchronous>, transform_indices = @transform_2, window_bounds = array<i64: 8, 128>}]} {
    %c0 = arith.constant 0 : index
    %c0_0 = arith.constant 0 : index
    %0 = vector.load %arg1[%c0, %c0_0] : memref<256x128xbf16, #tpu.memory_space<vmem>>, vector<256x128xbf16>
    %c0_1 = arith.constant 0 : index
    %c0_2 = arith.constant 0 : index
    %1 = vector.load %arg1[%c0_1, %c0_2] : memref<256x128xbf16, #tpu.memory_space<vmem>>, vector<256x128xbf16>
    %cst = arith.constant dense<0.000000e+00> : vector<256x256xf32>
    %2 = tpu.matmul %0, %1, %cst {dimension_numbers = #tpu.dot_dimension_numbers<[1], [1], [0], [0], [0, 0, 1, 0], [], []>} : vector<256x128xbf16>, vector<256x128xbf16>, vector<256x256xf32> -> vector<256x256xf32>
    %c0_3 = arith.constant 0 : index
    %c0_4 = arith.constant 0 : index
    %3 = vector.load %arg2[%c0_3, %c0_4] : memref<256x128xbf16, #tpu.memory_space<vmem>>, vector<256x128xbf16>
    %c0_5 = arith.constant 0 : index
    %c0_6 = arith.constant 0 : index
    %4 = vector.load %arg2[%c0_5, %c0_6] : memref<256x128xbf16, #tpu.memory_space<vmem>>, vector<256x128xbf16>
    %cst_7 = arith.constant dense<0.000000e+00> : vector<256x256xf32>
    %5 = tpu.matmul %3, %4, %cst_7 {dimension_numbers = #tpu.dot_dimension_numbers<[1], [1], [0], [0], [0, 0, 1, 0], [], []>} : vector<256x128xbf16>, vector<256x128xbf16>, vector<256x256xf32> -> vector<256x256xf32>
    %cst_8 = arith.constant 1.000000e+00 : f32
    %6 = vector.broadcast %cst_8 : f32 to vector<256x256xf32>
    %7 = arith.addf %2, %6 : vector<256x256xf32>
    %cst_9 = arith.constant 5.000000e-01 : f32
    %8 = vector.broadcast %cst_9 : f32 to vector<256x256xf32>
    %9 = arith.mulf %7, %8 : vector<256x256xf32>
    %cst_10 = arith.constant 1.000000e+00 : f32
    %10 = vector.broadcast %cst_10 : f32 to vector<256x256xf32>
    %11 = arith.addf %5, %10 : vector<256x256xf32>
    %cst_11 = arith.constant 5.000000e-01 : f32
    %12 = vector.broadcast %cst_11 : f32 to vector<256x256xf32>
    %13 = arith.mulf %11, %12 : vector<256x256xf32>
    %14 = tpu.iota {dimensions = array<i32: 1>} : vector<1x256xi32>
    %c200_i32 = arith.constant 200 : i32
    %15 = vector.broadcast %c200_i32 : i32 to vector<1x256xi32>
    %16 = arith.cmpi slt, %14, %15 : vector<1x256xi32>
    %cst_12 = arith.constant 0.000000e+00 : f32
    %17 = vector.shape_cast %16 : vector<1x256xi1> to vector<1x256xi1>
    %18 = vector.broadcast %17 : vector<1x256xi1> to vector<256x256xi1>
    %19 = vector.broadcast %cst_12 : f32 to vector<256x256xf32>
    %20 = arith.select %18, %9, %19 : vector<256x256xi1>, vector<256x256xf32>
    %cst_13 = arith.constant 0.000000e+00 : f32
    %21 = vector.shape_cast %16 : vector<1x256xi1> to vector<1x256xi1>
    %22 = vector.broadcast %21 : vector<1x256xi1> to vector<256x256xi1>
    %23 = vector.broadcast %cst_13 : f32 to vector<256x256xf32>
    %24 = arith.select %22, %13, %23 : vector<256x256xi1>, vector<256x256xf32>
    %cst_14 = arith.constant dense<0.000000e+00> : vector<256xf32>
    %25 = vector.multi_reduction <add>, %20, %cst_14 [1] : vector<256x256xf32> to vector<256xf32>
    %26 = vector.shape_cast %25 : vector<256xf32> to vector<256x1xf32>
    %27 = tpu.reciprocal %26 : vector<256x1xf32> -> vector<256x1xf32>
    %28 = vector.broadcast %27 : vector<256x1xf32> to vector<256x256xf32>
    %29 = arith.mulf %20, %28 : vector<256x256xf32>
    %cst_15 = arith.constant dense<0.000000e+00> : vector<256xf32>
    %30 = vector.multi_reduction <add>, %24, %cst_15 [1] : vector<256x256xf32> to vector<256xf32>
    %31 = vector.shape_cast %30 : vector<256xf32> to vector<256x1xf32>
    %32 = tpu.reciprocal %31 : vector<256x1xf32> -> vector<256x1xf32>
    %33 = vector.broadcast %32 : vector<256x1xf32> to vector<256x256xf32>
    %34 = arith.mulf %24, %33 : vector<256x256xf32>
    %cst_16 = arith.constant 9.99999997E-7 : f32
    %35 = vector.broadcast %cst_16 : f32 to vector<256x256xf32>
    %36 = arith.addf %34, %35 : vector<256x256xf32>
    %37 = math.log %36 : vector<256x256xf32>
    %cst_17 = arith.constant 9.99999997E-7 : f32
    %38 = vector.broadcast %cst_17 : f32 to vector<256x256xf32>
    %39 = arith.addf %29, %38 : vector<256x256xf32>
    %40 = math.log %39 : vector<256x256xf32>
    %41 = arith.subf %37, %40 : vector<256x256xf32>
    %42 = arith.mulf %34, %41 : vector<256x256xf32>
    %43 = vector.shape_cast %42 : vector<256x256xf32> to vector<1x256x256xf32>
    %cst_18 = arith.constant dense<0.000000e+00> : vector<1xf32>
    %44 = vector.multi_reduction <add>, %43, %cst_18 [1, 2] : vector<1x256x256xf32> to vector<1xf32>
    %45 = vector.shape_cast %44 : vector<1xf32> to vector<1x1x1xf32>
    %46 = vector.extract %45[0, 0, 0] : f32 from vector<1x1x1xf32>
    %47 = vector.broadcast %46 : f32 to vector<8x128xf32>
    %c0_19 = arith.constant 0 : index
    %c0_20 = arith.constant 0 : index
    %48 = vector.load %arg3[%c0_19, %c0_20] : memref<8x128xf32, #tpu.memory_space<vmem>>, vector<8x128xf32>
    tpu.vector_store %arg3[%c0_19, %c0_20], %47 {strides = array<i32>} : memref<8x128xf32, #tpu.memory_space<vmem>>, vector<8x128xf32>,
    return
  }
  func.func @transform_0(%arg0: i32) -> (i32, i32) {
    %c0_i32 = arith.constant 0 : i32
    %c0_i32_0 = arith.constant 0 : i32
    %c0_i32_1 = arith.constant 0 : i32
    return %c0_i32, %c0_i32_0 : i32, i32
  }
  func.func @transform_1(%arg0: i32) -> (i32, i32) {
    %c0_i32 = arith.constant 0 : i32
    %c0_i32_0 = arith.constant 0 : i32
    %c0_i32_1 = arith.constant 0 : i32
    return %c0_i32, %c0_i32_0 : i32, i32
  }
  func.func @transform_2(%arg0: i32) -> (i32, i32) {
    %c0_i32 = arith.constant 0 : i32
    %c0_i32_0 = arith.constant 0 : i32
    %c0_i32_1 = arith.constant 0 : i32
    return %c0_i32, %c0_i32_0 : i32, i32
  }
}

</mosaic_0001>

<bundles_post_ra>
// kernel: pkt_cos_sim.1
= control target key start
LH: loop header
LB: loop body
LE: loop exit
PB: predicated region body
PF: predicated region fallthrough
CT: control target
= control target key end

     0   :  { %v782_v32 = vlaneseq  ;;  %s3586_s0 = inlined_call_operand.vmem [shape: bf16[256,128], index: 0, kind: input, shape index: {}]   ;;  %s3587_s1 = inlined_call_operand.vmem [shape: bf16[256,128], index: 1, kind: input, shape index: {}]   ;;  %s3588_s2 = inlined_call_operand.vmem [shape: f32[8,128], index: 2, kind: output, shape index: {}]  }
   0x1   :  { %v2457_v0 = vld [vmem:[%s3586_s0 + $0x40] sm:$0xff]   ;;  %v2475_v4 = vld [vmem:[%s3586_s0 + $0x48] sm:$0xff]   ;;  %v2493_v8 = vld [vmem:[%s3586_s0 + $0x50] sm:$0xff]  }
   0x2   :  { %v2462_v1 = vld [vmem:[%s3587_s1 + $0x40] sm:$0xff]   ;;  %1925 = vmatprep.subr.bf16.mxu0 %v2457_v0  ;;  %v2480_v5 = vld [vmem:[%s3587_s1 + $0x48] sm:$0xff]   ;;  %v2498_v9 = vld [vmem:[%s3587_s1 + $0x50] sm:$0xff]   ;;  %v783_v33 = vand.u32 127, %v782_v32 }
   0x3   :  { %v2025_v2 = vld [vmem:[%s3586_s0] sm:$0xff]   ;;  %1973 = vmatprep.subr.bf16.mxu1 %v2462_v1  ;;  %v2029_v6 = vld [vmem:[%s3586_s0 + $0x8] sm:$0xff]   ;;  %v2033_v10 = vld [vmem:[%s3586_s0 + $0x10] sm:$0xff]  }
   0x4   :  { %v2026_v3 = vld [vmem:[%s3587_s1] sm:$0xff]   ;;  %1926 = vmatpush3.bf16.xpose.msra.mxu0 %v2025_v2  ;;  %1941 = vmatprep.mubr.bf16.mxu0 %v2025_v2  ;;  %v2030_v7 = vld [vmem:[%s3587_s1 + $0x8] sm:$0xff]   ;;  %v2034_v11 = vld [vmem:[%s3587_s1 + $0x10] sm:$0xff]   ;;  %v2630_v34 = vadd.s32 128, %v783_v33 }
   0x5   :  { %1974 = vmatpush3.bf16.xpose.msra.mxu1 %v2026_v3  ;;  %1989 = vmatprep.mubr.bf16.mxu1 %v2026_v3  ;;  %v2511_v12 = vld [vmem:[%s3586_s0 + $0x58] sm:$0xff]   ;;  %v2529_v16 = vld [vmem:[%s3586_s0 + $0x60] sm:$0xff]   ;;  %v2547_v20 = vld [vmem:[%s3586_s0 + $0x68] sm:$0xff]  }
   0x6   :  { %1927 = vmatprep.subr.bf16.mxu0 %v2475_v4  ;;  %1975 = vmatprep.subr.bf16.mxu1 %v2480_v5  ;;  %v2516_v13 = vld [vmem:[%s3587_s1 + $0x58] sm:$0xff]   ;;  %v2534_v17 = vld [vmem:[%s3587_s1 + $0x60] sm:$0xff]   ;;  %v2552_v21 = vld [vmem:[%s3587_s1 + $0x68] sm:$0xff]   ;;  %vm786_vm0 = vcmp.lt.s32.totalorder %v2630_v34, 200 }
   0x7   :  { %v2037_v14 = vld [vmem:[%s3586_s0 + $0x18] sm:$0xff]   ;;  %v2041_v18 = vld [vmem:[%s3586_s0 + $0x20] sm:$0xff]   ;;  %v2045_v22 = vld [vmem:[%s3586_s0 + $0x28] sm:$0xff]  }
   0x8   :  { %v2038_v15 = vld [vmem:[%s3587_s1 + $0x18] sm:$0xff]   ;;  %v2042_v19 = vld [vmem:[%s3587_s1 + $0x20] sm:$0xff]   ;;  %v2046_v23 = vld [vmem:[%s3587_s1 + $0x28] sm:$0xff]  }
   0x9   :  { %v2565_v24 = vld [vmem:[%s3586_s0 + $0x70] sm:$0xff]   ;;  %v2583_v28 = vld [vmem:[%s3586_s0 + $0x78] sm:$0xff]  }
   0xa   :  { %v2570_v25 = vld [vmem:[%s3587_s1 + $0x70] sm:$0xff]   ;;  %v2588_v29 = vld [vmem:[%s3587_s1 + $0x78] sm:$0xff]  }
   0xb   :  { %v2049_v26 = vld [vmem:[%s3586_s0 + $0x30] sm:$0xff]   ;;  %v2053_v30 = vld [vmem:[%s3586_s0 + $0x38] sm:$0xff]  }
   0xc   :  { %1928 = vmatpush3.bf16.xpose.msra.mxu0 %v2029_v6  ;;  %v2050_v27 = vld [vmem:[%s3587_s1 + $0x30] sm:$0xff]   ;;  %v2054_v31 = vld [vmem:[%s3587_s1 + $0x38] sm:$0xff]  }
   0xd   :  { %1976 = vmatpush3.bf16.xpose.msra.mxu1 %v2030_v7  ;;  %1929 = vmatprep.subr.bf16.mxu0 %v2493_v8 }
   0xe   :  { %1977 = vmatprep.subr.bf16.mxu1 %v2498_v9 }
  0x14   :  { %1930 = vmatpush3.bf16.xpose.msra.mxu0 %v2033_v10 }
  0x15   :  { %1978 = vmatpush3.bf16.xpose.msra.mxu1 %v2034_v11  ;;  %1931 = vmatprep.subr.bf16.mxu0 %v2511_v12 }
  0x16   :  { %1979 = vmatprep.subr.bf16.mxu1 %v2516_v13 }
  0x1c   :  { %1932 = vmatpush3.bf16.xpose.msra.mxu0 %v2037_v14 }
  0x1d   :  { %1980 = vmatpush3.bf16.xpose.msra.mxu1 %v2038_v15  ;;  %1933 = vmatprep.subr.bf16.mxu0 %v2529_v16 }
  0x1e   :  { %1981 = vmatprep.subr.bf16.mxu1 %v2534_v17 }
  0x24   :  { %1934 = vmatpush3.bf16.xpose.msra.mxu0 %v2041_v18 }
  0x25   :  { %1982 = vmatpush3.bf16.xpose.msra.mxu1 %v2042_v19  ;;  %1935 = vmatprep.subr.bf16.mxu0 %v2547_v20 }
  0x26   :  { %1983 = vmatprep.subr.bf16.mxu1 %v2552_v21 }
  0x2c   :  { %1936 = vmatpush3.bf16.xpose.msra.mxu0 %v2045_v22 }
  0x2d   :  { %1984 = vmatpush3.bf16.xpose.msra.mxu1 %v2046_v23  ;;  %1937 = vmatprep.subr.bf16.mxu0 %v2565_v24 }
  0x2e   :  { %1985 = vmatprep.subr.bf16.mxu1 %v2570_v25 }
  0x34   :  { %1938 = vmatpush3.bf16.xpose.msra.mxu0 %v2049_v26 }
  0x35   :  { %1986 = vmatpush3.bf16.xpose.msra.mxu1 %v2050_v27  ;;  %1939 = vmatprep.subr.bf16.mxu0 %v2583_v28 }
  0x36   :  { %1987 = vmatprep.subr.bf16.mxu1 %v2588_v29 }
  0x3c   :  { %1940 = vmatpush3.bf16.xpose.msra.mxu0 %v2053_v30 }
  0x3d   :  { %1988 = vmatpush3.bf16.xpose.msra.mxu1 %v2054_v31 }
  0x43   :  { %1942 = vmatmul.mubr.bf16.vlgmr.msra.gmra.mrb[0].mxu0 %v2025_v2 }
  0x44   :  { %1990 = vmatmul.mubr.bf16.vlgmr.msra.gmra.mrb[0].mxu1 %v2026_v3  ;;  %1943 = vmatprep.mubr.bf16.mxu0 %v2029_v6 }
  0x45   :  { %1991 = vmatprep.mubr.bf16.mxu1 %v2030_v7 }
  0x4b   :  { %1944 = vmatmul.mubr.bf16.gmra.mrb[4].mxu0 %v2029_v6 }
  0x4c   :  { %1992 = vmatmul.mubr.bf16.gmra.mrb[4].mxu1 %v2030_v7  ;;  %1945 = vmatprep.mubr.bf16.mxu0 %v2033_v10 }
  0x4d   :  { %1993 = vmatprep.mubr.bf16.mxu1 %v2034_v11 }
  0x53   :  { %1946 = vmatmul.mubr.bf16.gmra.mrb[8].mxu0 %v2033_v10 }
  0x54   :  { %1994 = vmatmul.mubr.bf16.gmra.mrb[8].mxu1 %v2034_v11  ;;  %1947 = vmatprep.mubr.bf16.mxu0 %v2037_v14 }
  0x55   :  { %1995 = vmatprep.mubr.bf16.mxu1 %v2038_v15 }
  0x5b   :  { %1948 = vmatmul.mubr.bf16.gmra.mrb[12].mxu0 %v2037_v14 }
  0x5c   :  { %1996 = vmatmul.mubr.bf16.gmra.mrb[12].mxu1 %v2038_v15  ;;  %1949 = vmatprep.mubr.bf16.mxu0 %v2041_v18 }
  0x5d   :  { %1997 = vmatprep.mubr.bf16.mxu1 %v2042_v19 }
  0x63   :  { %1950 = vmatmul.mubr.bf16.gmra.mrb[16].mxu0 %v2041_v18 }
  0x64   :  { %1998 = vmatmul.mubr.bf16.gmra.mrb[16].mxu1 %v2042_v19  ;;  %1951 = vmatprep.mubr.bf16.mxu0 %v2045_v22 }
  0x65   :  { %1999 = vmatprep.mubr.bf16.mxu1 %v2046_v23 }
  0x6b   :  { %1952 = vmatmul.mubr.bf16.gmra.mrb[20].mxu0 %v2045_v22 }
  0x6c   :  { %2000 = vmatmul.mubr.bf16.gmra.mrb[20].mxu1 %v2046_v23  ;;  %1953 = vmatprep.mubr.bf16.mxu0 %v2049_v26 }
  0x6d   :  { %2001 = vmatprep.mubr.bf16.mxu1 %v2050_v27 }
  0x73   :  { %1954 = vmatmul.mubr.bf16.gmra.mrb[24].mxu0 %v2049_v26 }
  0x74   :  { %2002 = vmatmul.mubr.bf16.gmra.mrb[24].mxu1 %v2050_v27  ;;  %1955 = vmatprep.mubr.bf16.mxu0 %v2053_v30 }
  0x75   :  { %2003 = vmatprep.mubr.bf16.mxu1 %v2054_v31 }
  0x7b   :  { %1956 = vmatmul.mubr.bf16.gmra.mrb[28].mxu0 %v2053_v30 }
  0x7c   :  { %2004 = vmatmul.mubr.bf16.gmra.mrb[28].mxu1 %v2054_v31  ;;  %1957 = vmatprep.mubr.bf16.mxu0 %v2457_v0 }
  0x7d   :  { %2005 = vmatprep.mubr.bf16.mxu1 %v2462_v1 }
  0x83   :  { %1958 = vmatmul.mubr.bf16.gmra.mrb[32].mxu0 %v2457_v0 }
  0x84   :  { %2006 = vmatmul.mubr.bf16.gmra.mrb[32].mxu1 %v2462_v1  ;;  %1959 = vmatprep.mubr.bf16.mxu0 %v2475_v4 }
  0x85   :  { %2007 = vmatprep.mubr.bf16.mxu1 %v2480_v5 }
  0x8b   :  { %1960 = vmatmul.mubr.bf16.gmra.mrb[36].mxu0 %v2475_v4 }
  0x8c   :  { %2008 = vmatmul.mubr.bf16.gmra.mrb[36].mxu1 %v2480_v5  ;;  %1961 = vmatprep.mubr.bf16.mxu0 %v2493_v8 }
  0x8d   :  { %2009 = vmatprep.mubr.bf16.mxu1 %v2498_v9 }
  0x93   :  { %1962 = vmatmul.mubr.bf16.gmra.mrb[40].mxu0 %v2493_v8 }
  0x94   :  { %2010 = vmatmul.mubr.bf16.gmra.mrb[40].mxu1 %v2498_v9  ;;  %1963 = vmatprep.mubr.bf16.mxu0 %v2511_v12 }
  0x95   :  { %2011 = vmatprep.mubr.bf16.mxu1 %v2516_v13 }
  0x9b   :  { %1964 = vmatmul.mubr.bf16.gmra.mrb[44].mxu0 %v2511_v12 }
  0x9c   :  { %2012 = vmatmul.mubr.bf16.gmra.mrb[44].mxu1 %v2516_v13  ;;  %1965 = vmatprep.mubr.bf16.mxu0 %v2529_v16 }
  0x9d   :  { %2013 = vmatprep.mubr.bf16.mxu1 %v2534_v17 }
  0xa3   :  { %1966 = vmatmul.mubr.bf16.gmra.mrb[48].mxu0 %v2529_v16 }
  0xa4   :  { %2014 = vmatmul.mubr.bf16.gmra.mrb[48].mxu1 %v2534_v17  ;;  %1967 = vmatprep.mubr.bf16.mxu0 %v2547_v20 }
  0xa5   :  { %2015 = vmatprep.mubr.bf16.mxu1 %v2552_v21 }
  0xab   :  { %1968 = vmatmul.mubr.bf16.gmra.mrb[52].mxu0 %v2547_v20 }
  0xac   :  { %2016 = vmatmul.mubr.bf16.gmra.mrb[52].mxu1 %v2552_v21  ;;  %1969 = vmatprep.mubr.bf16.mxu0 %v2565_v24 }
  0xad   :  { %2017 = vmatprep.mubr.bf16.mxu1 %v2570_v25 }
  0xb3   :  { %1970 = vmatmul.mubr.bf16.gmra.mrb[56].mxu0 %v2565_v24 }
  0xb4   :  { %2018 = vmatmul.mubr.bf16.gmra.mrb[56].mxu1 %v2570_v25  ;;  %1971 = vmatprep.mubr.bf16.mxu0 %v2583_v28 }
  0xb5   :  { %2019 = vmatprep.mubr.bf16.mxu1 %v2588_v29 }
  0xbb   :  { %1972 = vmatmul.mubr.bf16.gmra.mrb[60].mxu0 %v2583_v28 }
  0xbc   :  { %2020 = vmatmul.mubr.bf16.gmra.mrb[60].mxu1 %v2588_v29 }
 0x116   :  { %v206_v35 = vpop.f32.mrb[0].mxu0 }
 0x117   :  { %v207_v36 = vadd.f32 1.0, %v206_v35  ;;  %v559_v37 = vpop.f32.mrb[0].mxu1  ;;  %v208_v38 = vpop.f32.mrb[1].mxu0 }
 0x118   :  { %v209_v39 = vadd.f32 1.0, %v208_v38  ;;  %v561_v40 = vpop.f32.mrb[1].mxu1  ;;  %v210_v41 = vpop.f32.mrb[2].mxu0  ;;  %v560_v42 = vadd.f32 1.0, %v559_v37 }
 0x119   :  { %v562_v43 = vadd.f32 1.0, %v561_v40  ;;  %v211_v44 = vadd.f32 1.0, %v210_v41  ;;  %v563_v45 = vpop.f32.mrb[2].mxu1  ;;  %v212_v46 = vpop.f32.mrb[3].mxu0  ;;  %v2633_v50 = vmul.f32 0.5, %v207_v36 }
 0x11a   :  { %v366_v47 = vmul.f32 0.5, %v209_v39  ;;  %v213_v48 = vadd.f32 1.0, %v212_v46  ;;  %v565_v49 = vpop.f32.mrb[3].mxu1  ;;  %v564_v53 = vadd.f32 1.0, %v563_v45  ;;  %v2639_v56 = vmul.f32 0.5, %v560_v42 }
 0x11b   :  { %v719_v51 = vmul.f32 0.5, %v562_v43  ;;  %v566_v52 = vadd.f32 1.0, %v565_v49  ;;  %v2641_v57 = vmul.f32 0.5, %v211_v44 }
 0x11c   :  { %v368_v54 = vmul.f32 0.5, %v213_v48  ;;  %v2637_v55 = vsel %vm786_vm0, %v366_v47, 0.0  ;;  %v2659_v4 = vmul.f32 0.5, %v564_v53 }
 0x11d   :  { %v721_v58 = vmul.f32 0.5, %v566_v52  ;;  %v919_v59 = vadd.f32 %v2637_v55, %v2633_v50  ;;  %v2651_v62 = vsel %vm786_vm0, %v719_v51, 0.0 }
 0x11e   :  { %v216_v60 = vpop.f32.mrb[4].mxu0  ;;  %v2647_v61 = vsel %vm786_vm0, %v368_v54, 0.0  ;;  %v1111_v13 = vadd.f32 %v2651_v62, %v2639_v56 }
 0x11f   :  { %v217_v63 = vadd.f32 1.0, %v216_v60  ;;  %v569_v0 = vpop.f32.mrb[4].mxu1  ;;  %v218_v1 = vpop.f32.mrb[5].mxu0  ;;  %920 = vadd.xlane.f32.xlu0 %v919_v59  ;;  %v922_v2 = vadd.f32 %v2647_v61, %v2641_v57  ;;  %v2657_v3 = vsel %vm786_vm0, %v721_v58, 0.0 }
 0x120   :  { %v570_v5 = vadd.f32 1.0, %v569_v0  ;;  %v219_v6 = vadd.f32 1.0, %v218_v1  ;;  %v571_v7 = vpop.f32.mrb[5].mxu1  ;;  %v220_v8 = vpop.f32.mrb[6].mxu0  ;;  %v1114_v17 = vadd.f32 %v2657_v3, %v2659_v4 }
 0x121   :  { %v2661_v9 = vmul.f32 0.5, %v217_v63  ;;  %v572_v10 = vadd.f32 1.0, %v571_v7  ;;  %v573_v11 = vpop.f32.mrb[6].mxu1  ;;  %v222_v12 = vpop.f32.mrb[7].mxu0  ;;  %923 = vadd.xlane.f32.xlu1 %v922_v2  ;;  %v221_v20 = vadd.f32 1.0, %v220_v8 }
 0x122   :  { %v370_v14 = vmul.f32 0.5, %v219_v6  ;;  %v223_v15 = vadd.f32 1.0, %v222_v12  ;;  %v575_v16 = vpop.f32.mrb[7].mxu1  ;;  %v2667_v18 = vmul.f32 0.5, %v570_v5  ;;  %v574_v22 = vadd.f32 1.0, %v573_v11 }
 0x123   :  { %v723_v19 = vmul.f32 0.5, %v572_v10  ;;  %v576_v21 = vadd.f32 1.0, %v575_v16  ;;  %1112 = vadd.xlane.f32.xlu0 %v1111_v13  ;;  %v2683_v30 = vmul.f32 0.5, %v221_v20 }
 0x124   :  { %v372_v23 = vmul.f32 0.5, %v223_v15  ;;  %v2671_v24 = vsel %vm786_vm0, %v370_v14, 0.0  ;;  %v2691_v37 = vmul.f32 0.5, %v574_v22 }
 0x125   :  { %v725_v25 = vmul.f32 0.5, %v576_v21  ;;  %1115 = vadd.xlane.f32.xlu1 %v1114_v17  ;;  %v925_v26 = vadd.f32 %v2671_v24, %v2661_v9  ;;  %v2677_v27 = vsel %vm786_vm0, %v723_v19, 0.0 }
 0x126   :  { %v226_v28 = vpop.f32.mrb[8].mxu0  ;;  %v2681_v29 = vsel %vm786_vm0, %v372_v23, 0.0  ;;  %v1117_v35 = vadd.f32 %v2677_v27, %v2667_v18 }
 0x127   :  { %v227_v31 = vadd.f32 1.0, %v226_v28  ;;  %v579_v32 = vpop.f32.mrb[8].mxu1  ;;  %v228_v33 = vpop.f32.mrb[9].mxu0  ;;  %926 = vadd.xlane.f32.xlu0 %v925_v26  ;;  %v2689_v36 = vsel %vm786_vm0, %v725_v25, 0.0  ;;  %v928_v46 = vadd.f32 %v2681_v29, %v2683_v30 }
 0x128   :  { %v580_v38 = vadd.f32 1.0, %v579_v32  ;;  %v229_v39 = vadd.f32 1.0, %v228_v33  ;;  %v581_v40 = vpop.f32.mrb[9].mxu1  ;;  %v230_v41 = vpop.f32.mrb[10].mxu0  ;;  %v1120_v51 = vadd.f32 %v2689_v36, %v2691_v37 }
 0x129   :  { %v2693_v42 = vmul.f32 0.5, %v227_v31  ;;  %v582_v43 = vadd.f32 1.0, %v581_v40  ;;  %v583_v44 = vpop.f32.mrb[10].mxu1  ;;  %v232_v45 = vpop.f32.mrb[11].mxu0  ;;  %1118 = vadd.xlane.f32.xlu1 %v1117_v35  ;;  %v231_v54 = vadd.f32 1.0, %v230_v41 }
 0x12a   :  { %v374_v47 = vmul.f32 0.5, %v229_v39  ;;  %v233_v48 = vadd.f32 1.0, %v232_v45  ;;  %v585_v49 = vpop.f32.mrb[11].mxu1  ;;  %v2699_v52 = vmul.f32 0.5, %v580_v38  ;;  %v584_v59 = vadd.f32 1.0, %v583_v44 }
 0x12b   :  { %v727_v53 = vmul.f32 0.5, %v582_v43  ;;  %v586_v58 = vadd.f32 1.0, %v585_v49  ;;  %929 = vadd.xlane.f32.xlu0 %v928_v46  ;;  %v2715_v7 = vmul.f32 0.5, %v231_v54 }
 0x12c   :  { %v376_v60 = vmul.f32 0.5, %v233_v48  ;;  %v2703_v63 = vsel %vm786_vm0, %v374_v47, 0.0  ;;  %v2723_v14 = vmul.f32 0.5, %v584_v59 }
 0x12d   :  { %v729_v0 = vmul.f32 0.5, %v586_v58  ;;  %1121 = vadd.xlane.f32.xlu1 %v1120_v51  ;;  %v931_v1 = vadd.f32 %v2703_v63, %v2693_v42  ;;  %v2709_v2 = vsel %vm786_vm0, %v727_v53, 0.0 }
 0x12e   :  { %v236_v5 = vpop.f32.mrb[12].mxu0  ;;  %v2713_v6 = vsel %vm786_vm0, %v376_v60, 0.0  ;;  %v1123_v12 = vadd.f32 %v2709_v2, %v2699_v52 }
 0x12f   :  { %v237_v8 = vadd.f32 1.0, %v236_v5  ;;  %v589_v10 = vpop.f32.mrb[12].mxu1  ;;  %v238_v11 = vpop.f32.mrb[13].mxu0  ;;  %932 = vadd.xlane.f32.xlu0 %v931_v1  ;;  %v2721_v13 = vsel %vm786_vm0, %v729_v0, 0.0  ;;  %v934_v25 = vadd.f32 %v2713_v6, %v2715_v7 }
 0x130   :  { %v590_v15 = vadd.f32 1.0, %v589_v10  ;;  %v239_v16 = vadd.f32 1.0, %v238_v11  ;;  %v591_v17 = vpop.f32.mrb[13].mxu1  ;;  %v240_v19 = vpop.f32.mrb[14].mxu0  ;;  %v1126_v32 = vadd.f32 %v2721_v13, %v2723_v14 }
 0x131   :  { %v2725_v20 = vmul.f32 0.5, %v237_v8  ;;  %v592_v21 = vadd.f32 1.0, %v591_v17  ;;  %v593_v22 = vpop.f32.mrb[14].mxu1  ;;  %v242_v23 = vpop.f32.mrb[15].mxu0  ;;  %1124 = vadd.xlane.f32.xlu1 %v1123_v12  ;;  %v241_v38 = vadd.f32 1.0, %v240_v19 }
 0x132   :  { %v378_v26 = vmul.f32 0.5, %v239_v16  ;;  %v243_v28 = vadd.f32 1.0, %v242_v23  ;;  %v595_v31 = vpop.f32.mrb[15].mxu1  ;;  %v2731_v33 = vmul.f32 0.5, %v590_v15  ;;  %v594_v40 = vadd.f32 1.0, %v593_v22 }
 0x133   :  { %v731_v35 = vmul.f32 0.5, %v592_v21  ;;  %v596_v39 = vadd.f32 1.0, %v595_v31  ;;  %935 = vadd.xlane.f32.xlu0 %v934_v25  ;;  %v2747_v49 = vmul.f32 0.5, %v241_v38 }
 0x134   :  { %v380_v41 = vmul.f32 0.5, %v243_v28  ;;  %v2735_v43 = vsel %vm786_vm0, %v378_v26, 0.0  ;;  %v2755_v60 = vmul.f32 0.5, %v594_v40 }
 0x135   :  { %v733_v44 = vmul.f32 0.5, %v596_v39  ;;  %1127 = vadd.xlane.f32.xlu1 %v1126_v32  ;;  %v937_v45 = vadd.f32 %v2735_v43, %v2725_v20  ;;  %v2741_v46 = vsel %vm786_vm0, %v731_v35, 0.0 }
 0x136   :  { %v246_v47 = vpop.f32.mrb[16].mxu0  ;;  %v2745_v48 = vsel %vm786_vm0, %v380_v41, 0.0  ;;  %v1129_v58 = vadd.f32 %v2741_v46, %v2731_v33 }
 0x137   :  { %v247_v51 = vadd.f32 1.0, %v246_v47  ;;  %v599_v53 = vpop.f32.mrb[16].mxu1  ;;  %v248_v54 = vpop.f32.mrb[17].mxu0  ;;  %938 = vadd.xlane.f32.xlu0 %v937_v45  ;;  %v2753_v59 = vsel %vm786_vm0, %v733_v44, 0.0  ;;  %v940_v16 = vadd.f32 %v2745_v48, %v2747_v49 }
 0x138   :  { %v600_v0 = vadd.f32 1.0, %v599_v53  ;;  %v249_v1 = vadd.f32 1.0, %v248_v54  ;;  %v601_v5 = vpop.f32.mrb[17].mxu1  ;;  %v250_v8 = vpop.f32.mrb[18].mxu0  ;;  %v1132_v22 = vadd.f32 %v2753_v59, %v2755_v60 }
 0x139   :  { %v2757_v10 = vmul.f32 0.5, %v247_v51  ;;  %v602_v11 = vadd.f32 1.0, %v601_v5  ;;  %v603_v12 = vpop.f32.mrb[18].mxu1  ;;  %v252_v15 = vpop.f32.mrb[19].mxu0  ;;  %1130 = vadd.xlane.f32.xlu1 %v1129_v58  ;;  %v251_v26 = vadd.f32 1.0, %v250_v8 }
 0x13a   :  { %v382_v17 = vmul.f32 0.5, %v249_v1  ;;  %v253_v19 = vadd.f32 1.0, %v252_v15  ;;  %v605_v21 = vpop.f32.mrb[19].mxu1  ;;  %v2763_v23 = vmul.f32 0.5, %v600_v0  ;;  %v604_v31 = vadd.f32 1.0, %v603_v12 }
 0x13b   :  { %v735_v25 = vmul.f32 0.5, %v602_v11  ;;  %v606_v28 = vadd.f32 1.0, %v605_v21  ;;  %941 = vadd.xlane.f32.xlu0 %v940_v16  ;;  %v2779_v45 = vmul.f32 0.5, %v251_v26 }
 0x13c   :  { %v384_v32 = vmul.f32 0.5, %v253_v19  ;;  %v2767_v35 = vsel %vm786_vm0, %v382_v17, 0.0  ;;  %v2787_v0 = vmul.f32 0.5, %v604_v31 }
 0x13d   :  { %v737_v38 = vmul.f32 0.5, %v606_v28  ;;  %1133 = vadd.xlane.f32.xlu1 %v1132_v22  ;;  %v943_v39 = vadd.f32 %v2767_v35, %v2757_v10  ;;  %v2773_v40 = vsel %vm786_vm0, %v735_v25, 0.0 }
 0x13e   :  { %v256_v41 = vpop.f32.mrb[20].mxu0  ;;  %v2777_v44 = vsel %vm786_vm0, %v384_v32, 0.0  ;;  %v1135_v54 = vadd.f32 %v2773_v40, %v2763_v23 }
 0x13f   :  { %v257_v47 = vadd.f32 1.0, %v256_v41  ;;  %v609_v51 = vpop.f32.mrb[20].mxu1  ;;  %v258_v53 = vpop.f32.mrb[21].mxu0  ;;  %944 = vadd.xlane.f32.xlu0 %v943_v39  ;;  %v2785_v58 = vsel %vm786_vm0, %v737_v38, 0.0  ;;  %v946_v19 = vadd.f32 %v2777_v44, %v2779_v45 }
 0x140   :  { %3675 = vst [vmem:[#allocation2_spill] sm:$0xff] %v2785_v58  ;;  %v610_v1 = vadd.f32 1.0, %v609_v51  ;;  %v259_v5 = vadd.f32 1.0, %v258_v53  ;;  %v611_v8 = vpop.f32.mrb[21].mxu1  ;;  %v260_v11 = vpop.f32.mrb[22].mxu0  ;;  %v1138_v26 = vadd.f32 %v2785_v58, %v2787_v0 }
 0x141   :  { %v2789_v12 = vmul.f32 0.5, %v257_v47  ;;  %v612_v15 = vadd.f32 1.0, %v611_v8  ;;  %v613_v16 = vpop.f32.mrb[22].mxu1  ;;  %v262_v17 = vpop.f32.mrb[23].mxu0  ;;  %1136 = vadd.xlane.f32.xlu1 %v1135_v54  ;;  %v261_v32 = vadd.f32 1.0, %v260_v11 }
 0x142   :  { %v386_v21 = vmul.f32 0.5, %v259_v5  ;;  %v263_v22 = vadd.f32 1.0, %v262_v17  ;;  %v615_v25 = vpop.f32.mrb[23].mxu1  ;;  %v2795_v28 = vmul.f32 0.5, %v610_v1  ;;  %v614_v39 = vadd.f32 1.0, %v613_v16 }
 0x143   :  { %3676 = vst [vmem:[#allocation3_spill] sm:$0xff] %v2789_v12  ;;  %v739_v31 = vmul.f32 0.5, %v612_v15  ;;  %v616_v38 = vadd.f32 1.0, %v615_v25  ;;  %947 = vadd.xlane.f32.xlu0 %v946_v19  ;;  %v2811_v8 = vmul.f32 0.5, %v261_v32 }
 0x144   :  { %3677 = vst [vmem:[#allocation4_spill] sm:$0xff] %v2795_v28  ;;  %v388_v41 = vmul.f32 0.5, %v263_v22  ;;  %v2799_v47 = vsel %vm786_vm0, %v386_v21, 0.0  ;;  %v2819_v21 = vmul.f32 0.5, %v614_v39 }
 0x145   :  { %3678 = vst [vmem:[#allocation5_spill] sm:$0xff] %v2799_v47  ;;  %v741_v51 = vmul.f32 0.5, %v616_v38  ;;  %1139 = vadd.xlane.f32.xlu1 %v1138_v26  ;;  %v949_v53 = vadd.f32 %v2799_v47, %v2789_v12  ;;  %v2805_v54 = vsel %vm786_vm0, %v739_v31, 0.0  ;;  %3681 = vst [vmem:[#allocation8_spill] sm:$0xff] %v2811_v8 }
 0x146   :  { %3679 = vst [vmem:[#allocation6_spill] sm:$0xff] %v2805_v54  ;;  %v266_v1 = vpop.f32.mrb[24].mxu0  ;;  %v2809_v5 = vsel %vm786_vm0, %v388_v41, 0.0  ;;  %v1141_v17 = vadd.f32 %v2805_v54, %v2795_v28  ;;  %3683 = vst [vmem:[#allocation10_spill] sm:$0xff] %v2819_v21 }
 0x147   :  { %3680 = vst [vmem:[#allocation7_spill] sm:$0xff] %v2809_v5  ;;  %v267_v11 = vadd.f32 1.0, %v266_v1  ;;  %v619_v15 = vpop.f32.mrb[24].mxu1  ;;  %v268_v16 = vpop.f32.mrb[25].mxu0  ;;  %950 = vadd.xlane.f32.xlu0 %v949_v53  ;;  %v2817_v19 = vsel %vm786_vm0, %v741_v51, 0.0  ;;  %v952_v53 = vadd.f32 %v2809_v5, %v2811_v8 }
 0x148   :  { %3682 = vst [vmem:[#allocation9_spill] sm:$0xff] %v2817_v19  ;;  %v620_v22 = vadd.f32 1.0, %v619_v15  ;;  %v269_v25 = vadd.f32 1.0, %v268_v16  ;;  %v621_v26 = vpop.f32.mrb[25].mxu1  ;;  %v270_v31 = vpop.f32.mrb[26].mxu0  ;;  %v1144_v39 = vadd.f32 %v2817_v19, %v2819_v21 }
 0x149   :  { %v2821_v38 = vmul.f32 0.5, %v267_v11  ;;  %v622_v32 = vadd.f32 1.0, %v621_v26  ;;  %v623_v41 = vpop.f32.mrb[26].mxu1  ;;  %v272_v1 = vpop.f32.mrb[27].mxu0  ;;  %1142 = vadd.xlane.f32.xlu1 %v1141_v17  ;;  %v271_v16 = vadd.f32 1.0, %v270_v31 }
 0x14a   :  { %v390_v54 = vmul.f32 0.5, %v269_v25  ;;  %v273_v28 = vadd.f32 1.0, %v272_v1  ;;  %v625_v47 = vpop.f32.mrb[27].mxu1  ;;  %v2827_v51 = vmul.f32 0.5, %v620_v22  ;;  %v624_v11 = vadd.f32 1.0, %v623_v41 }
 0x14b   :  { %3684 = vst [vmem:[#allocation11_spill] sm:$0xff] %v2821_v38  ;;  %v743_v15 = vmul.f32 0.5, %v622_v32  ;;  %v626_v12 = vadd.f32 1.0, %v625_v47  ;;  %953 = vadd.xlane.f32.xlu0 %v952_v53  ;;  %v2843_v31 = vmul.f32 0.5, %v271_v16 }
 0x14c   :  { %3685 = vst [vmem:[#allocation12_spill] sm:$0xff] %v2827_v51  ;;  %v392_v26 = vmul.f32 0.5, %v273_v28  ;;  %v2831_v17 = vsel %vm786_vm0, %v390_v54, 0.0  ;;  %v2851_v53 = vmul.f32 0.5, %v624_v11 }
 0x14d   :  { %3686 = vst [vmem:[#allocation13_spill] sm:$0xff] %v2831_v17  ;;  %v745_v58 = vmul.f32 0.5, %v626_v12  ;;  %1145 = vadd.xlane.f32.xlu1 %v1144_v39  ;;  %v955_v25 = vadd.f32 %v2831_v17, %v2821_v38  ;;  %v2837_v1 = vsel %vm786_vm0, %v743_v15, 0.0  ;;  %3689 = vst [vmem:[#allocation16_spill] sm:$0xff] %v2843_v31 }
 0x14e   :  { %3687 = vst [vmem:[#allocation14_spill] sm:$0xff] %v2837_v1  ;;  %v276_v22 = vpop.f32.mrb[28].mxu0  ;;  %v2841_v47 = vsel %vm786_vm0, %v392_v26, 0.0  ;;  %v1147_v12 = vadd.f32 %v2837_v1, %v2827_v51  ;;  %3691 = vst [vmem:[#allocation18_spill] sm:$0xff] %v2851_v53 }
 0x14f   :  { %3688 = vst [vmem:[#allocation15_spill] sm:$0xff] %v2841_v47  ;;  %v277_v28 = vadd.f32 1.0, %v276_v22  ;;  %v629_v32 = vpop.f32.mrb[28].mxu1  ;;  %v278_v54 = vpop.f32.mrb[29].mxu0  ;;  %956 = vadd.xlane.f32.xlu0 %v955_v25  ;;  %v2849_v41 = vsel %vm786_vm0, %v745_v58, 0.0  ;;  %v958_v25 = vadd.f32 %v2841_v47, %v2843_v31 }
 0x150   :  { %3690 = vst [vmem:[#allocation17_spill] sm:$0xff] %v2849_v41  ;;  %v630_v39 = vadd.f32 1.0, %v629_v32  ;;  %v279_v15 = vadd.f32 1.0, %v278_v54  ;;  %v631_v17 = vpop.f32.mrb[29].mxu1  ;;  %v280_v26 = vpop.f32.mrb[30].mxu0  ;;  %v1150_v58 = vadd.f32 %v2849_v41, %v2851_v53 }
 0x151   :  { %v2853_v38 = vmul.f32 0.5, %v277_v28  ;;  %v632_v16 = vadd.f32 1.0, %v631_v17  ;;  %v633_v22 = vpop.f32.mrb[30].mxu1  ;;  %v282_v19 = vpop.f32.mrb[31].mxu0  ;;  %1148 = vadd.xlane.f32.xlu1 %v1147_v12  ;;  %v281_v54 = vadd.f32 1.0, %v280_v26 }
 0x152   :  { %v394_v1 = vmul.f32 0.5, %v279_v15  ;;  %v283_v51 = vadd.f32 1.0, %v282_v19  ;;  %v635_v21 = vpop.f32.mrb[31].mxu1  ;;  %v2859_v11 = vmul.f32 0.5, %v630_v39  ;;  %v634_v28 = vadd.f32 1.0, %v633_v22 }
 0x153   :  { %3692 = vst [vmem:[#allocation19_spill] sm:$0xff] %v2853_v38  ;;  %v747_v32 = vmul.f32 0.5, %v632_v16  ;;  %v636_v5 = vadd.f32 1.0, %v635_v21  ;;  %959 = vadd.xlane.f32.xlu0 %v958_v25  ;;  %v2875_v26 = vmul.f32 0.5, %v281_v54 }
 0x154   :  { %3693 = vst [vmem:[#allocation20_spill] sm:$0xff] %v2859_v11  ;;  %v396_v17 = vmul.f32 0.5, %v283_v51  ;;  %v2863_v12 = vsel %vm786_vm0, %v394_v1, 0.0  ;;  %v2883_v25 = vmul.f32 0.5, %v634_v28 }
 0x155   :  { %3694 = vst [vmem:[#allocation21_spill] sm:$0xff] %v2863_v12  ;;  %v749_v8 = vmul.f32 0.5, %v636_v5  ;;  %1151 = vadd.xlane.f32.xlu1 %v1150_v58  ;;  %v961_v19 = vadd.f32 %v2863_v12, %v2853_v38  ;;  %v2869_v15 = vsel %vm786_vm0, %v747_v32, 0.0  ;;  %3697 = vst [vmem:[#allocation24_spill] sm:$0xff] %v2875_v26 }
 0x156   :  { %3695 = vst [vmem:[#allocation22_spill] sm:$0xff] %v2869_v15  ;;  %v286_v39 = vpop.f32.mrb[32].mxu0  ;;  %v2873_v21 = vsel %vm786_vm0, %v396_v17, 0.0  ;;  %v1153_v5 = vadd.f32 %v2869_v15, %v2859_v11  ;;  %3699 = vst [vmem:[#allocation26_spill] sm:$0xff] %v2883_v25 }
 0x157   :  { %3696 = vst [vmem:[#allocation23_spill] sm:$0xff] %v2873_v21  ;;  %v287_v51 = vadd.f32 1.0, %v286_v39  ;;  %v639_v16 = vpop.f32.mrb[32].mxu1  ;;  %v288_v1 = vpop.f32.mrb[33].mxu0  ;;  %962 = vadd.xlane.f32.xlu0 %v961_v19  ;;  %v2881_v22 = vsel %vm786_vm0, %v749_v8, 0.0  ;;  %v964_v19 = vadd.f32 %v2873_v21, %v2875_v26 }
 0x158   :  { %3698 = vst [vmem:[#allocation25_spill] sm:$0xff] %v2881_v22  ;;  %v640_v58 = vadd.f32 1.0, %v639_v16  ;;  %v289_v32 = vadd.f32 1.0, %v288_v1  ;;  %v641_v12 = vpop.f32.mrb[33].mxu1  ;;  %v290_v17 = vpop.f32.mrb[34].mxu0  ;;  %v1156_v8 = vadd.f32 %v2881_v22, %v2883_v25 }
 0x159   :  { %v2885_v38 = vmul.f32 0.5, %v287_v51  ;;  %v642_v54 = vadd.f32 1.0, %v641_v12  ;;  %v643_v39 = vpop.f32.mrb[34].mxu1  ;;  %v292_v41 = vpop.f32.mrb[35].mxu0  ;;  %1154 = vadd.xlane.f32.xlu1 %v1153_v5  ;;  %v291_v1 = vadd.f32 1.0, %v290_v17 }
 0x15a   :  { %v398_v15 = vmul.f32 0.5, %v289_v32  ;;  %v293_v11 = vadd.f32 1.0, %v292_v41  ;;  %v645_v53 = vpop.f32.mrb[35].mxu1  ;;  %v2891_v28 = vmul.f32 0.5, %v640_v58  ;;  %v644_v51 = vadd.f32 1.0, %v643_v39 }
 0x15b   :  { %3700 = vst [vmem:[#allocation27_spill] sm:$0xff] %v2885_v38  ;;  %v751_v16 = vmul.f32 0.5, %v642_v54  ;;  %v646_v47 = vadd.f32 1.0, %v645_v53  ;;  %965 = vadd.xlane.f32.xlu0 %v964_v19  ;;  %v2907_v17 = vmul.f32 0.5, %v291_v1 }
 0x15c   :  { %3701 = vst [vmem:[#allocation28_spill] sm:$0xff] %v2891_v28  ;;  %v400_v12 = vmul.f32 0.5, %v293_v11  ;;  %v2895_v5 = vsel %vm786_vm0, %v398_v15, 0.0  ;;  %v2915_v19 = vmul.f32 0.5, %v644_v51 }
 0x15d   :  { %3702 = vst [vmem:[#allocation29_spill] sm:$0xff] %v2895_v5  ;;  %v753_v31 = vmul.f32 0.5, %v646_v47  ;;  %1157 = vadd.xlane.f32.xlu1 %v1156_v8  ;;  %v967_v41 = vadd.f32 %v2895_v5, %v2885_v38  ;;  %v2901_v32 = vsel %vm786_vm0, %v751_v16, 0.0  ;;  %3705 = vst [vmem:[#allocation32_spill] sm:$0xff] %v2907_v17 }
 0x15e   :  { %3703 = vst [vmem:[#allocation30_spill] sm:$0xff] %v2901_v32  ;;  %v296_v58 = vpop.f32.mrb[36].mxu0  ;;  %v2905_v53 = vsel %vm786_vm0, %v400_v12, 0.0  ;;  %v1159_v47 = vadd.f32 %v2901_v32, %v2891_v28  ;;  %3707 = vst [vmem:[#allocation34_spill] sm:$0xff] %v2915_v19 }
 0x15f   :  { %3704 = vst [vmem:[#allocation31_spill] sm:$0xff] %v2905_v53  ;;  %v297_v11 = vadd.f32 1.0, %v296_v58  ;;  %v649_v54 = vpop.f32.mrb[36].mxu1  ;;  %v298_v15 = vpop.f32.mrb[37].mxu0  ;;  %968 = vadd.xlane.f32.xlu0 %v967_v41  ;;  %v2913_v39 = vsel %vm786_vm0, %v753_v31, 0.0  ;;  %v970_v41 = vadd.f32 %v2905_v53, %v2907_v17 }
 0x160   :  { %3706 = vst [vmem:[#allocation33_spill] sm:$0xff] %v2913_v39  ;;  %v650_v8 = vadd.f32 1.0, %v649_v54  ;;  %v299_v16 = vadd.f32 1.0, %v298_v15  ;;  %v651_v5 = vpop.f32.mrb[37].mxu1  ;;  %v300_v12 = vpop.f32.mrb[38].mxu0  ;;  %v1162_v31 = vadd.f32 %v2913_v39, %v2915_v19 }
 0x161   :  { %v2917_v38 = vmul.f32 0.5, %v297_v11  ;;  %v652_v1 = vadd.f32 1.0, %v651_v5  ;;  %v653_v58 = vpop.f32.mrb[38].mxu1  ;;  %v302_v22 = vpop.f32.mrb[39].mxu0  ;;  %1160 = vadd.xlane.f32.xlu1 %v1159_v47  ;;  %v301_v15 = vadd.f32 1.0, %v300_v12 }
 0x162   :  { %v402_v32 = vmul.f32 0.5, %v299_v16  ;;  %v303_v28 = vadd.f32 1.0, %v302_v22  ;;  %v655_v25 = vpop.f32.mrb[39].mxu1  ;;  %v2923_v51 = vmul.f32 0.5, %v650_v8  ;;  %v654_v11 = vadd.f32 1.0, %v653_v58 }
 0x163   :  { %3708 = vst [vmem:[#allocation35_spill] sm:$0xff] %v2917_v38  ;;  %v755_v54 = vmul.f32 0.5, %v652_v1  ;;  %v656_v21 = vadd.f32 1.0, %v655_v25  ;;  %971 = vadd.xlane.f32.xlu0 %v970_v41  ;;  %v2939_v12 = vmul.f32 0.5, %v301_v15 }
 0x164   :  { %3709 = vst [vmem:[#allocation36_spill] sm:$0xff] %v2923_v51  ;;  %v404_v5 = vmul.f32 0.5, %v303_v28  ;;  %v2927_v47 = vsel %vm786_vm0, %v402_v32, 0.0  ;;  %v2947_v41 = vmul.f32 0.5, %v654_v11 }
 0x165   :  { %3710 = vst [vmem:[#allocation37_spill] sm:$0xff] %v2927_v47  ;;  %v757_v26 = vmul.f32 0.5, %v656_v21  ;;  %1163 = vadd.xlane.f32.xlu1 %v1162_v31  ;;  %v973_v22 = vadd.f32 %v2927_v47, %v2917_v38  ;;  %v2933_v16 = vsel %vm786_vm0, %v755_v54, 0.0  ;;  %3713 = vst [vmem:[#allocation40_spill] sm:$0xff] %v2939_v12 }
 0x166   :  { %3711 = vst [vmem:[#allocation38_spill] sm:$0xff] %v2933_v16  ;;  %v306_v8 = vpop.f32.mrb[40].mxu0  ;;  %v2937_v25 = vsel %vm786_vm0, %v404_v5, 0.0  ;;  %v1165_v21 = vadd.f32 %v2933_v16, %v2923_v51  ;;  %3715 = vst [vmem:[#allocation42_spill] sm:$0xff] %v2947_v41 }
 0x167   :  { %3712 = vst [vmem:[#allocation39_spill] sm:$0xff] %v2937_v25  ;;  %v307_v28 = vadd.f32 1.0, %v306_v8  ;;  %v659_v1 = vpop.f32.mrb[40].mxu1  ;;  %v308_v32 = vpop.f32.mrb[41].mxu0  ;;  %974 = vadd.xlane.f32.xlu0 %v973_v22  ;;  %v2945_v58 = vsel %vm786_vm0, %v757_v26, 0.0  ;;  %v976_v22 = vadd.f32 %v2937_v25, %v2939_v12 }
 0x168   :  { %3714 = vst [vmem:[#allocation41_spill] sm:$0xff] %v2945_v58  ;;  %v660_v31 = vadd.f32 1.0, %v659_v1  ;;  %v309_v54 = vadd.f32 1.0, %v308_v32  ;;  %v661_v47 = vpop.f32.mrb[41].mxu1  ;;  %v310_v5 = vpop.f32.mrb[42].mxu0  ;;  %v1168_v26 = vadd.f32 %v2945_v58, %v2947_v41 }
 0x169   :  { %v2949_v38 = vmul.f32 0.5, %v307_v28  ;;  %v662_v15 = vadd.f32 1.0, %v661_v47  ;;  %v663_v8 = vpop.f32.mrb[42].mxu1  ;;  %v312_v39 = vpop.f32.mrb[43].mxu0  ;;  %1166 = vadd.xlane.f32.xlu1 %v1165_v21  ;;  %v311_v32 = vadd.f32 1.0, %v310_v5 }
 0x16a   :  { %v406_v16 = vmul.f32 0.5, %v309_v54  ;;  %v313_v51 = vadd.f32 1.0, %v312_v39  ;;  %v665_v19 = vpop.f32.mrb[43].mxu1  ;;  %v2955_v11 = vmul.f32 0.5, %v660_v31  ;;  %v664_v28 = vadd.f32 1.0, %v663_v8 }
 0x16b   :  { %3716 = vst [vmem:[#allocation43_spill] sm:$0xff] %v2949_v38  ;;  %v759_v1 = vmul.f32 0.5, %v662_v15  ;;  %v666_v53 = vadd.f32 1.0, %v665_v19  ;;  %977 = vadd.xlane.f32.xlu0 %v976_v22  ;;  %v2971_v5 = vmul.f32 0.5, %v311_v32 }
 0x16c   :  { %3717 = vst [vmem:[#allocation44_spill] sm:$0xff] %v2955_v11  ;;  %v408_v47 = vmul.f32 0.5, %v313_v51  ;;  %v2959_v21 = vsel %vm786_vm0, %v406_v16, 0.0  ;;  %v2979_v22 = vmul.f32 0.5, %v664_v28 }
 0x16d   :  { %3718 = vst [vmem:[#allocation45_spill] sm:$0xff] %v2959_v21  ;;  %v761_v17 = vmul.f32 0.5, %v666_v53  ;;  %1169 = vadd.xlane.f32.xlu1 %v1168_v26  ;;  %v979_v39 = vadd.f32 %v2959_v21, %v2949_v38  ;;  %v2965_v54 = vsel %vm786_vm0, %v759_v1, 0.0  ;;  %3721 = vst [vmem:[#allocation48_spill] sm:$0xff] %v2971_v5 }
 0x16e   :  { %3719 = vst [vmem:[#allocation46_spill] sm:$0xff] %v2965_v54  ;;  %v316_v31 = vpop.f32.mrb[44].mxu0  ;;  %v2969_v19 = vsel %vm786_vm0, %v408_v47, 0.0  ;;  %v1171_v53 = vadd.f32 %v2965_v54, %v2955_v11  ;;  %3723 = vst [vmem:[#allocation50_spill] sm:$0xff] %v2979_v22 }
 0x16f   :  { %3720 = vst [vmem:[#allocation47_spill] sm:$0xff] %v2969_v19  ;;  %v317_v51 = vadd.f32 1.0, %v316_v31  ;;  %v669_v15 = vpop.f32.mrb[44].mxu1  ;;  %v318_v16 = vpop.f32.mrb[45].mxu0  ;;  %980 = vadd.xlane.f32.xlu0 %v979_v39  ;;  %v2977_v8 = vsel %vm786_vm0, %v761_v17, 0.0  ;;  %v982_v39 = vadd.f32 %v2969_v19, %v2971_v5 }
 0x170   :  { %3722 = vst [vmem:[#allocation49_spill] sm:$0xff] %v2977_v8  ;;  %v670_v26 = vadd.f32 1.0, %v669_v15  ;;  %v319_v1 = vadd.f32 1.0, %v318_v16  ;;  %v671_v21 = vpop.f32.mrb[45].mxu1  ;;  %v320_v47 = vpop.f32.mrb[46].mxu0  ;;  %v1174_v17 = vadd.f32 %v2977_v8, %v2979_v22 }
 0x171   :  { %v2981_v38 = vmul.f32 0.5, %v317_v51  ;;  %v672_v32 = vadd.f32 1.0, %v671_v21  ;;  %v673_v31 = vpop.f32.mrb[46].mxu1  ;;  %v322_v58 = vpop.f32.mrb[47].mxu0  ;;  %1172 = vadd.xlane.f32.xlu1 %v1171_v53  ;;  %v321_v16 = vadd.f32 1.0, %v320_v47 }
 0x172   :  { %v410_v54 = vmul.f32 0.5, %v319_v1  ;;  %v323_v11 = vadd.f32 1.0, %v322_v58  ;;  %v675_v41 = vpop.f32.mrb[47].mxu1  ;;  %v2987_v28 = vmul.f32 0.5, %v670_v26  ;;  %v674_v51 = vadd.f32 1.0, %v673_v31 }
 0x173   :  { %3724 = vst [vmem:[#allocation51_spill] sm:$0xff] %v2981_v38  ;;  %v763_v15 = vmul.f32 0.5, %v672_v32  ;;  %v676_v25 = vadd.f32 1.0, %v675_v41  ;;  %983 = vadd.xlane.f32.xlu0 %v982_v39  ;;  %v3003_v47 = vmul.f32 0.5, %v321_v16 }
 0x174   :  { %3725 = vst [vmem:[#allocation52_spill] sm:$0xff] %v2987_v28  ;;  %v412_v21 = vmul.f32 0.5, %v323_v11  ;;  %v2991_v53 = vsel %vm786_vm0, %v410_v54, 0.0  ;;  %v3011_v39 = vmul.f32 0.5, %v674_v51 }
 0x175   :  { %3726 = vst [vmem:[#allocation53_spill] sm:$0xff] %v2991_v53  ;;  %v765_v12 = vmul.f32 0.5, %v676_v25  ;;  %1175 = vadd.xlane.f32.xlu1 %v1174_v17  ;;  %v985_v58 = vadd.f32 %v2991_v53, %v2981_v38  ;;  %v2997_v1 = vsel %vm786_vm0, %v763_v15, 0.0  ;;  %3729 = vst [vmem:[#allocation56_spill] sm:$0xff] %v3003_v47 }
 0x176   :  { %3727 = vst [vmem:[#allocation54_spill] sm:$0xff] %v2997_v1  ;;  %v326_v26 = vpop.f32.mrb[48].mxu0  ;;  %v3001_v41 = vsel %vm786_vm0, %v412_v21, 0.0  ;;  %v1177_v25 = vadd.f32 %v2997_v1, %v2987_v28  ;;  %3731 = vst [vmem:[#allocation58_spill] sm:$0xff] %v3011_v39 }
 0x177   :  { %3728 = vst [vmem:[#allocation55_spill] sm:$0xff] %v3001_v41  ;;  %v327_v11 = vadd.f32 1.0, %v326_v26  ;;  %v679_v32 = vpop.f32.mrb[48].mxu1  ;;  %v328_v54 = vpop.f32.mrb[49].mxu0  ;;  %986 = vadd.xlane.f32.xlu0 %v985_v58  ;;  %v3009_v31 = vsel %vm786_vm0, %v765_v12, 0.0  ;;  %v988_v58 = vadd.f32 %v3001_v41, %v3003_v47 }
 0x178   :  { %3730 = vst [vmem:[#allocation57_spill] sm:$0xff] %v3009_v31  ;;  %v680_v17 = vadd.f32 1.0, %v679_v32  ;;  %v329_v15 = vadd.f32 1.0, %v328_v54  ;;  %v681_v53 = vpop.f32.mrb[49].mxu1  ;;  %v330_v21 = vpop.f32.mrb[50].mxu0  ;;  %v1180_v12 = vadd.f32 %v3009_v31, %v3011_v39 }
 0x179   :  { %v3013_v38 = vmul.f32 0.5, %v327_v11  ;;  %v682_v16 = vadd.f32 1.0, %v681_v53  ;;  %v683_v26 = vpop.f32.mrb[50].mxu1  ;;  %v332_v8 = vpop.f32.mrb[51].mxu0  ;;  %1178 = vadd.xlane.f32.xlu1 %v1177_v25  ;;  %v331_v54 = vadd.f32 1.0, %v330_v21 }
 0x17a   :  { %v414_v1 = vmul.f32 0.5, %v329_v15  ;;  %v333_v28 = vadd.f32 1.0, %v332_v8  ;;  %v685_v22 = vpop.f32.mrb[51].mxu1  ;;  %v3019_v51 = vmul.f32 0.5, %v680_v17  ;;  %v684_v11 = vadd.f32 1.0, %v683_v26 }
 0x17b   :  { %3732 = vst [vmem:[#allocation59_spill] sm:$0xff] %v3013_v38  ;;  %v767_v32 = vmul.f32 0.5, %v682_v16  ;;  %v686_v19 = vadd.f32 1.0, %v685_v22  ;;  %989 = vadd.xlane.f32.xlu0 %v988_v58  ;;  %v3035_v21 = vmul.f32 0.5, %v331_v54 }
 0x17c   :  { %3733 = vst [vmem:[#allocation60_spill] sm:$0xff] %v3019_v51  ;;  %v416_v53 = vmul.f32 0.5, %v333_v28  ;;  %v3023_v25 = vsel %vm786_vm0, %v414_v1, 0.0  ;;  %v3043_v58 = vmul.f32 0.5, %v684_v11 }
 0x17d   :  { %3734 = vst [vmem:[#allocation61_spill] sm:$0xff] %v3023_v25  ;;  %v769_v5 = vmul.f32 0.5, %v686_v19  ;;  %1181 = vadd.xlane.f32.xlu1 %v1180_v12  ;;  %v991_v8 = vadd.f32 %v3023_v25, %v3013_v38  ;;  %v3029_v15 = vsel %vm786_vm0, %v767_v32, 0.0  ;;  %3737 = vst [vmem:[#allocation64_spill] sm:$0xff] %v3035_v21 }
 0x17e   :  { %3735 = vst [vmem:[#allocation62_spill] sm:$0xff] %v3029_v15  ;;  %v336_v17 = vpop.f32.mrb[52].mxu0  ;;  %v3033_v22 = vsel %vm786_vm0, %v416_v53, 0.0  ;;  %v1183_v19 = vadd.f32 %v3029_v15, %v3019_v51  ;;  %3739 = vst [vmem:[#allocation66_spill] sm:$0xff] %v3043_v58 }
 0x17f   :  { %3736 = vst [vmem:[#allocation63_spill] sm:$0xff] %v3033_v22  ;;  %v337_v28 = vadd.f32 1.0, %v336_v17  ;;  %v689_v16 = vpop.f32.mrb[52].mxu1  ;;  %v338_v1 = vpop.f32.mrb[53].mxu0  ;;  %992 = vadd.xlane.f32.xlu0 %v991_v8  ;;  %v3041_v26 = vsel %vm786_vm0, %v769_v5, 0.0  ;;  %v994_v8 = vadd.f32 %v3033_v22, %v3035_v21 }
 0x180   :  { %3738 = vst [vmem:[#allocation65_spill] sm:$0xff] %v3041_v26  ;;  %v690_v12 = vadd.f32 1.0, %v689_v16  ;;  %v339_v32 = vadd.f32 1.0, %v338_v1  ;;  %v691_v25 = vpop.f32.mrb[53].mxu1  ;;  %v340_v53 = vpop.f32.mrb[54].mxu0  ;;  %v1186_v5 = vadd.f32 %v3041_v26, %v3043_v58 }
 0x181   :  { %v3045_v38 = vmul.f32 0.5, %v337_v28  ;;  %v692_v54 = vadd.f32 1.0, %v691_v25  ;;  %v693_v17 = vpop.f32.mrb[54].mxu1  ;;  %v342_v31 = vpop.f32.mrb[55].mxu0  ;;  %1184 = vadd.xlane.f32.xlu1 %v1183_v19  ;;  %v341_v1 = vadd.f32 1.0, %v340_v53 }
 0x182   :  { %v418_v15 = vmul.f32 0.5, %v339_v32  ;;  %v343_v51 = vadd.f32 1.0, %v342_v31  ;;  %v695_v39 = vpop.f32.mrb[55].mxu1  ;;  %v3051_v11 = vmul.f32 0.5, %v690_v12  ;;  %v694_v28 = vadd.f32 1.0, %v693_v17 }
 0x183   :  { %3740 = vst [vmem:[#allocation67_spill] sm:$0xff] %v3045_v38  ;;  %v771_v16 = vmul.f32 0.5, %v692_v54  ;;  %v696_v41 = vadd.f32 1.0, %v695_v39  ;;  %995 = vadd.xlane.f32.xlu0 %v994_v8  ;;  %v3067_v53 = vmul.f32 0.5, %v341_v1 }
 0x184   :  { %3741 = vst [vmem:[#allocation68_spill] sm:$0xff] %v3051_v11  ;;  %v420_v25 = vmul.f32 0.5, %v343_v51  ;;  %v3055_v19 = vsel %vm786_vm0, %v418_v15, 0.0  ;;  %v3075_v8 = vmul.f32 0.5, %v694_v28 }
 0x185   :  { %3742 = vst [vmem:[#allocation69_spill] sm:$0xff] %v3055_v19  ;;  %v773_v47 = vmul.f32 0.5, %v696_v41  ;;  %1187 = vadd.xlane.f32.xlu1 %v1186_v5  ;;  %v997_v31 = vadd.f32 %v3055_v19, %v3045_v38  ;;  %v3061_v32 = vsel %vm786_vm0, %v771_v16, 0.0  ;;  %3745 = vst [vmem:[#allocation72_spill] sm:$0xff] %v3067_v53 }
 0x186   :  { %3743 = vst [vmem:[#allocation70_spill] sm:$0xff] %v3061_v32  ;;  %v346_v12 = vpop.f32.mrb[56].mxu0  ;;  %v3065_v39 = vsel %vm786_vm0, %v420_v25, 0.0  ;;  %v1189_v41 = vadd.f32 %v3061_v32, %v3051_v11  ;;  %3747 = vst [vmem:[#allocation74_spill] sm:$0xff] %v3075_v8 }
 0x187   :  { %3744 = vst [vmem:[#allocation71_spill] sm:$0xff] %v3065_v39  ;;  %v347_v51 = vadd.f32 1.0, %v346_v12  ;;  %v699_v54 = vpop.f32.mrb[56].mxu1  ;;  %v348_v15 = vpop.f32.mrb[57].mxu0  ;;  %998 = vadd.xlane.f32.xlu0 %v997_v31  ;;  %v3073_v17 = vsel %vm786_vm0, %v773_v47, 0.0  ;;  %v1000_v31 = vadd.f32 %v3065_v39, %v3067_v53 }
 0x188   :  { %3746 = vst [vmem:[#allocation73_spill] sm:$0xff] %v3073_v17  ;;  %v700_v5 = vadd.f32 1.0, %v699_v54  ;;  %v349_v16 = vadd.f32 1.0, %v348_v15  ;;  %v701_v19 = vpop.f32.mrb[57].mxu1  ;;  %v350_v25 = vpop.f32.mrb[58].mxu0  ;;  %v1192_v47 = vadd.f32 %v3073_v17, %v3075_v8 }
 0x189   :  { %v3077_v38 = vmul.f32 0.5, %v347_v51  ;;  %v702_v1 = vadd.f32 1.0, %v701_v19  ;;  %v703_v12 = vpop.f32.mrb[58].mxu1  ;;  %v352_v26 = vpop.f32.mrb[59].mxu0  ;;  %1190 = vadd.xlane.f32.xlu1 %v1189_v41  ;;  %v351_v15 = vadd.f32 1.0, %v350_v25 }
 0x18a   :  { %v422_v32 = vmul.f32 0.5, %v349_v16  ;;  %v353_v11 = vadd.f32 1.0, %v352_v26  ;;  %v705_v58 = vpop.f32.mrb[59].mxu1  ;;  %v3083_v28 = vmul.f32 0.5, %v700_v5  ;;  %v704_v51 = vadd.f32 1.0, %v703_v12 }
 0x18b   :  { %3748 = vst [vmem:[#allocation75_spill] sm:$0xff] %v3077_v38  ;;  %v775_v54 = vmul.f32 0.5, %v702_v1  ;;  %v706_v22 = vadd.f32 1.0, %v705_v58  ;;  %1001 = vadd.xlane.f32.xlu0 %v1000_v31  ;;  %v3099_v25 = vmul.f32 0.5, %v351_v15 }
 0x18c   :  { %3749 = vst [vmem:[#allocation76_spill] sm:$0xff] %v3083_v28  ;;  %v424_v19 = vmul.f32 0.5, %v353_v11  ;;  %v3087_v41 = vsel %vm786_vm0, %v422_v32, 0.0  ;;  %v3107_v31 = vmul.f32 0.5, %v704_v51 }
 0x18d   :  { %3750 = vst [vmem:[#allocation77_spill] sm:$0xff] %v3087_v41  ;;  %v777_v21 = vmul.f32 0.5, %v706_v22  ;;  %1193 = vadd.xlane.f32.xlu1 %v1192_v47  ;;  %v1003_v26 = vadd.f32 %v3087_v41, %v3077_v38  ;;  %v3093_v16 = vsel %vm786_vm0, %v775_v54, 0.0 }
 0x18e   :  { %3751 = vst [vmem:[#allocation78_spill] sm:$0xff] %v3093_v16  ;;  %v356_v5 = vpop.f32.mrb[60].mxu0  ;;  %v3097_v58 = vsel %vm786_vm0, %v424_v19, 0.0  ;;  %v1195_v22 = vadd.f32 %v3093_v16, %v3083_v28 }
 0x18f   :  { %v357_v11 = vadd.f32 1.0, %v356_v5  ;;  %v709_v1 = vpop.f32.mrb[60].mxu1  ;;  %v358_v32 = vpop.f32.mrb[61].mxu0  ;;  %1004 = vadd.xlane.f32.xlu0 %v1003_v26  ;;  %v3105_v12 = vsel %vm786_vm0, %v777_v21, 0.0  ;;  %v1006_v26 = vadd.f32 %v3097_v58, %v3099_v25 }
 0x190   :  { %3752 = vst [vmem:[#allocation79_spill] sm:$0xff] %v3105_v12  ;;  %v710_v47 = vadd.f32 1.0, %v709_v1  ;;  %v359_v54 = vadd.f32 1.0, %v358_v32  ;;  %v711_v41 = vpop.f32.mrb[61].mxu1  ;;  %v360_v19 = vpop.f32.mrb[62].mxu0  ;;  %v1198_v21 = vadd.f32 %v3105_v12, %v3107_v31 }
 0x191   :  { %v3109_v38 = vmul.f32 0.5, %v357_v11  ;;  %v712_v15 = vadd.f32 1.0, %v711_v41  ;;  %v713_v5 = vpop.f32.mrb[62].mxu1  ;;  %v362_v17 = vpop.f32.mrb[63].mxu0  ;;  %1196 = vadd.xlane.f32.xlu1 %v1195_v22  ;;  %v361_v32 = vadd.f32 1.0, %v360_v19 }
 0x192   :  { %v426_v16 = vmul.f32 0.5, %v359_v54  ;;  %v363_v28 = vadd.f32 1.0, %v362_v17  ;;  %v715_v8 = vpop.f32.mrb[63].mxu1  ;;  %v3115_v51 = vmul.f32 0.5, %v710_v47  ;;  %v714_v22 = vadd.f32 1.0, %v713_v5 }
 0x193   :  { %3753 = vst [vmem:[#allocation80_spill] sm:$0xff] %v3109_v38  ;;  %v779_v1 = vmul.f32 0.5, %v712_v15  ;;  %v716_v39 = vadd.f32 1.0, %v715_v8  ;;  %1007 = vadd.xlane.f32.xlu0 %v1006_v26  ;;  %v3131_v8 = vmul.f32 0.5, %v361_v32 }
 0x194   :  { %3754 = vst [vmem:[#allocation81_spill] sm:$0xff] %v3115_v51  ;;  %v428_v11 = vmul.f32 0.5, %v363_v28  ;;  %v3119_v41 = vsel %vm786_vm0, %v426_v16, 0.0  ;;  %v3139_v16 = vmul.f32 0.5, %v714_v22 }
 0x195   :  { %3755 = vst [vmem:[#allocation82_spill] sm:$0xff] %v3119_v41  ;;  %v781_v53 = vmul.f32 0.5, %v716_v39  ;;  %1199 = vadd.xlane.f32.xlu1 %v1198_v21  ;;  %v1009_v17 = vadd.f32 %v3119_v41, %v3109_v38  ;;  %v3125_v54 = vsel %vm786_vm0, %v779_v1, 0.0  ;;  %3758 = vst [vmem:[#allocation85_spill] sm:$0xff] %v3131_v8 }
 0x196   :  { %3756 = vst [vmem:[#allocation83_spill] sm:$0xff] %v3125_v54  ;;  %v3129_v47 = vsel %vm786_vm0, %v428_v11, 0.0  ;;  %v1201_v28 = vadd.f32 %v3125_v54, %v3115_v51  ;;  %3760 = vst [vmem:[#allocation87_spill] sm:$0xff] %v3139_v16 }
 0x197   :  { %3757 = vst [vmem:[#allocation84_spill] sm:$0xff] %v3129_v47  ;;  %1010 = vadd.xlane.f32.xlu0 %v1009_v17  ;;  %v3137_v39 = vsel %vm786_vm0, %v781_v53, 0.0  ;;  %v1012_v19 = vadd.f32 %v3129_v47, %v3131_v8 }
 0x198   :  { %3759 = vst [vmem:[#allocation86_spill] sm:$0xff] %v3137_v39  ;;  %v1204_v15 = vadd.f32 %v3137_v39, %v3139_v16 }
 0x199   :  { %1202 = vadd.xlane.f32.xlu1 %v1201_v28 }
 0x19b   :  { %1013 = vadd.xlane.f32.xlu0 %v1012_v19 }
 0x19d   :  { %1205 = vadd.xlane.f32.xlu1 %v1204_v15 }
 0x1ac   :  { %v921_v5 = vpop.xlane.xlu0 %920 }
 0x1ad   :  { %2055 = vrcp.f32 %v921_v5 }
 0x1ae   :  { %v924_v26 = vpop.xlane.xlu1 %923 }
 0x1af   :  { %2057 = vrcp.f32 %v924_v26 }
 0x1b0   :  { %v1113_v21 = vpop.xlane.xlu0 %1112 }
 0x1b1   :  { %2059 = vrcp.f32 %v1113_v21 }
 0x1b2   :  { %v1116_v34 = vpop.xlane.xlu1 %1115 }
 0x1b3   :  { %2061 = vrcp.f32 %v1116_v34 }
 0x1b4   :  { %v927_v53 = vpop.xlane.xlu0 %926 }
 0x1b5   :  { %2063 = vrcp.f32 %v927_v53 }
 0x1b6   :  { %v1119_v1 = vpop.xlane.xlu1 %1118 }
 0x1b7   :  { %v2056_v32 = vpop.eup %2055  ;;  %2065 = vrcp.f32 %v1119_v1 }
 0x1b8   :  { %v1047_v11 = vmul.f32 %v2056_v32, %v2633_v50  ;;  %v1048_v22 = vmul.f32 %v2056_v32, %v2637_v55  ;;  %v930_v17 = vpop.xlane.xlu0 %929 }
 0x1b9   :  { %v2058_v28 = vpop.eup %2057  ;;  %2067 = vrcp.f32 %v930_v17 }
 0x1ba   :  { %v1495_v19 = vadd.f32 1e-06, %v1047_v11  ;;  %v1496_v15 = vadd.f32 1e-06, %v1048_v22  ;;  %v1049_v5 = vmul.f32 %v2058_v28, %v2641_v57  ;;  %v1050_v26 = vmul.f32 %v2058_v28, %v2647_v61  ;;  %v1122_v21 = vpop.xlane.xlu1 %1121 }
 0x1bb   :  { %v2060_v34 = vpop.eup %2059  ;;  %2069 = vrcp.f32 %v1122_v21 }
 0x1bc   :  { %2071 = vlog2.f32 %v1495_v19  ;;  %v1497_v53 = vadd.f32 1e-06, %v1049_v5  ;;  %v1498_v47 = vadd.f32 1e-06, %v1050_v26  ;;  %v3150_v1 = vmul.f32 %v2060_v34, %v2639_v56  ;;  %v933_v50 = vpop.xlane.xlu0 %932 }
 0x1bd   :  { %v2062_v55 = vpop.eup %2061  ;;  %2073 = vlog2.f32 %v1496_v15  ;;  %v3153_v32 = vmul.f32 %v2060_v34, %v2651_v62 }
 0x1be   :  { %2075 = vlog2.f32 %v1497_v53  ;;  %v1303_v57 = vadd.f32 1e-06, %v3150_v1  ;;  %v3157_v61 = vmul.f32 %v2062_v55, %v2659_v4  ;;  %v3160_v11 = vmul.f32 %v2062_v55, %v2657_v3  ;;  %v1125_v22 = vpop.xlane.xlu1 %1124 }
 0x1bf   :  { %v2064_v17 = vpop.eup %2063  ;;  %2077 = vlog2.f32 %v1498_v47  ;;  %v1304_v56 = vadd.f32 1e-06, %v3153_v32 }
 0x1c0   :  { %2079 = vlog2.f32 %v1303_v57  ;;  %v1305_v28 = vadd.f32 1e-06, %v3157_v61  ;;  %v1306_v62 = vadd.f32 1e-06, %v3160_v11  ;;  %v1051_v19 = vmul.f32 %v2064_v17, %v2661_v9  ;;  %v936_v15 = vpop.xlane.xlu0 %935 }
 0x1c1   :  { %v2066_v5 = vpop.eup %2065  ;;  %2081 = vlog2.f32 %v1304_v56  ;;  %v1052_v4 = vmul.f32 %v2064_v17, %v2671_v24 }
 0x1c2   :  { %2083 = vlog2.f32 %v1305_v28  ;;  %v1499_v3 = vadd.f32 1e-06, %v1051_v19  ;;  %v3168_v26 = vmul.f32 %v2066_v5, %v2667_v18  ;;  %v3171_v47 = vmul.f32 %v2066_v5, %v2677_v27  ;;  %v1128_v21 = vpop.xlane.xlu1 %1127 }
 0x1c3   :  { %v2068_v34 = vpop.eup %2067  ;;  %2085 = vlog2.f32 %v1306_v62  ;;  %v1500_v53 = vadd.f32 1e-06, %v1052_v4 }
 0x1c4   :  { %2087 = vlog2.f32 %v1499_v3  ;;  %v1307_v9 = vadd.f32 1e-06, %v3168_v26  ;;  %v1308_v55 = vadd.f32 1e-06, %v3171_v47  ;;  %v1053_v57 = vmul.f32 %v2068_v34, %v2683_v30  ;;  %v939_v24 = vpop.xlane.xlu0 %938 }
 0x1c5   :  { %v2070_v17 = vpop.eup %2069  ;;  %2089 = vlog2.f32 %v1500_v53  ;;  %v1054_v18 = vmul.f32 %v2068_v34, %v2681_v29 }
 0x1c6   :  { %v2072_v56 = vpop.eup %2071  ;;  %2091 = vlog2.f32 %v1307_v9  ;;  %v1501_v27 = vadd.f32 1e-06, %v1053_v57  ;;  %v3178_v28 = vmul.f32 %v2070_v17, %v2691_v37  ;;  %v3181_v62 = vmul.f32 %v2070_v17, %v2689_v36  ;;  %v1131_v19 = vpop.xlane.xlu1 %1130 }
 0x1c7   :  { %v2074_v5 = vpop.eup %2073  ;;  %2093 = vlog2.f32 %v1308_v55  ;;  %v1502_v4 = vadd.f32 1e-06, %v1054_v18  ;;  %v1560_v39 = vmul.f32 0.6931472, %v2072_v56 }
 0x1c8   :  { %v2076_v3 = vpop.eup %2075  ;;  %2095 = vlog2.f32 %v1501_v27  ;;  %v1309_v30 = vadd.f32 1e-06, %v3178_v28  ;;  %v1310_v53 = vadd.f32 1e-06, %v3181_v62  ;;  %v942_v34 = vpop.xlane.xlu0 %941  ;;  %v1562_v8 = vmul.f32 0.6931472, %v2074_v5 }
 0x1c9   :  { %v2078_v29 = vpop.eup %2077  ;;  %2097 = vlog2.f32 %v1502_v4  ;;  %v1564_v27 = vmul.f32 0.6931472, %v2076_v3 }
 0x1ca   :  { %v2080_v9 = vpop.eup %2079  ;;  %2099 = vlog2.f32 %v1309_v30  ;;  %v1134_v37 = vpop.xlane.xlu1 %1133  ;;  %v1566_v41 = vmul.f32 0.6931472, %v2078_v29 }
 0x1cb   :  { %v2082_v57 = vpop.eup %2081  ;;  %v1368_v36 = vmul.f32 0.6931472, %v2080_v9  ;;  %2101 = vlog2.f32 %v1310_v53 }
 0x1cc   :  { %v2084_v17 = vpop.eup %2083  ;;  %v1370_v55 = vmul.f32 0.6931472, %v2082_v57  ;;  %2103 = vrcp.f32 %v933_v50  ;;  %v945_v53 = vpop.xlane.xlu0 %944 }
 0x1cd   :  { %v2086_v18 = vpop.eup %2085  ;;  %v1687_v16 = vsub.f32 %v1368_v36, %v1560_v39  ;;  %v1372_v54 = vmul.f32 0.6931472, %v2084_v17  ;;  %2105 = vrcp.f32 %v1125_v22 }
 0x1ce   :  { %v2088_v51 = vpop.eup %2087  ;;  %v1688_v4 = vsub.f32 %v1370_v55, %v1562_v8  ;;  %v1374_v38 = vmul.f32 0.6931472, %v2086_v18  ;;  %2107 = vrcp.f32 %v936_v15  ;;  %v1137_v3 = vpop.xlane.xlu1 %1136 }
 0x1cf   :  { %v2090_v30 = vpop.eup %2089  ;;  %v1751_v12 = vmul.f32 %v1687_v16, %v3150_v1  ;;  %v1689_v56 = vsub.f32 %v1372_v54, %v1564_v27  ;;  %2109 = vrcp.f32 %v1128_v21  ;;  %v1568_v57 = vmul.f32 0.6931472, %v2088_v51 }
 0x1d0   :  { %v2092_v9 = vpop.eup %2091  ;;  %v1752_v5 = vmul.f32 %v1688_v4, %v3153_v32  ;;  %v1690_v50 = vsub.f32 %v1374_v38, %v1566_v41  ;;  %2111 = vrcp.f32 %v939_v24  ;;  %v1570_v15 = vmul.f32 0.6931472, %v2090_v30  ;;  %v948_v55 = vpop.xlane.xlu0 %947 }
 0x1d1   :  { %v2094_v39 = vpop.eup %2093  ;;  %v1753_v22 = vmul.f32 %v1689_v56, %v3157_v61  ;;  %v1376_v29 = vmul.f32 0.6931472, %v2092_v9  ;;  %2113 = vrcp.f32 %v1131_v19 }
 0x1d2   :  { %v2096_v8 = vpop.eup %2095  ;;  %v1815_v36 = vadd.f32 %v1752_v5, %v1751_v12  ;;  %v1378_v17 = vmul.f32 0.6931472, %v2094_v39  ;;  %2115 = vrcp.f32 %v942_v34  ;;  %v1754_v21 = vmul.f32 %v1690_v50, %v3160_v11  ;;  %v1140_v27 = vpop.xlane.xlu1 %1139 }
 0x1d3   :  { %v2098_v16 = vpop.eup %2097  ;;  %v1691_v54 = vsub.f32 %v1376_v29, %v1568_v57  ;;  %2117 = vrcp.f32 %v1134_v37  ;;  %v1572_v61 = vmul.f32 0.6931472, %v2096_v8 }
 0x1d4   :  { %v2100_v1 = vpop.eup %2099  ;;  %v1816_v32 = vadd.f32 %v1815_v36, %v1753_v22  ;;  %v1692_v38 = vsub.f32 %v1378_v17, %v1570_v15  ;;  %2119 = vrcp.f32 %v945_v53  ;;  %v1574_v36 = vmul.f32 0.6931472, %v2098_v16  ;;  %v3214_v16 = vpop.xlane.xlu0 %950 }
 0x1d5   :  { %v2102_v41 = vpop.eup %2101  ;;  %v1755_v24 = vmul.f32 %v1691_v54, %v3168_v26  ;;  %v1380_v51 = vmul.f32 0.6931472, %v2100_v1  ;;  %2121 = vrcp.f32 %v1137_v3 }
 0x1d6   :  { %v2104_v12 = vpop.eup %2103  ;;  %v1817_v18 = vadd.f32 %v1816_v32, %v1754_v21  ;;  %v1756_v19 = vmul.f32 %v1692_v38, %v3171_v47  ;;  %v1382_v4 = vmul.f32 0.6931472, %v2102_v41  ;;  %2123 = vrcp.f32 %v948_v55  ;;  %v3224_v55 = vpop.xlane.xlu1 %1142 }
 0x1d7   :  { %v2106_v34 = vpop.eup %2105  ;;  %v1693_v30 = vsub.f32 %v1380_v51, %v1572_v61  ;;  %v1055_v11 = vmul.f32 %v2104_v12, %v2693_v42  ;;  %v1056_v37 = vmul.f32 %v2104_v12, %v2703_v63  ;;  %2125 = vrcp.f32 %v1140_v27 }
 0x1d8   :  { %v2108_v56 = vpop.eup %2107  ;;  %v1818_v9 = vadd.f32 %v1817_v18, %v1755_v24  ;;  %v3194_v26 = vmul.f32 %v2106_v34, %v2699_v52  ;;  %v3197_v53 = vmul.f32 %v2106_v34, %v2709_v2  ;;  %v1694_v21 = vsub.f32 %v1382_v4, %v1574_v36 }
 0x1d9   :  { %v2110_v5 = vpop.eup %2109  ;;  %v1503_v47 = vadd.f32 1e-06, %v1055_v11  ;;  %v1504_v50 = vadd.f32 1e-06, %v1056_v37  ;;  %v1057_v3 = vmul.f32 %v2108_v56, %v2715_v7  ;;  %v1757_v42 = vmul.f32 %v1693_v30, %v3178_v28 }
 0x1da   :  { %v2112_v39 = vpop.eup %2111  ;;  %v1819_v22 = vadd.f32 %v1818_v9, %v1756_v19  ;;  %v1311_v63 = vadd.f32 1e-06, %v3194_v26  ;;  %v1312_v57 = vadd.f32 1e-06, %v3197_v53  ;;  %v1058_v52 = vmul.f32 %v2108_v56, %v2713_v6 }
 0x1db   :  { %2127 = vlog2.f32 %v1503_v47  ;;  %v1505_v2 = vadd.f32 1e-06, %v1057_v3  ;;  %v3205_v29 = vmul.f32 %v2110_v5, %v2723_v14  ;;  %v2114_v8 = vpop.eup %2113  ;;  %v3208_v7 = vmul.f32 %v2110_v5, %v2721_v13  ;;  %v3248_v47 = vpop.xlane.xlu1 %1145 }
 0x1dc   :  { %2129 = vlog2.f32 %v1504_v50  ;;  %v1059_v15 = vmul.f32 %v2112_v39, %v2725_v20  ;;  %v2116_v28 = vpop.eup %2115  ;;  %v1506_v17 = vadd.f32 1e-06, %v1058_v52  ;;  %v1060_v1 = vmul.f32 %v2112_v39, %v2735_v43 }
 0x1dd   :  { %2131 = vlog2.f32 %v1311_v63  ;;  %v1313_v54 = vadd.f32 1e-06, %v3205_v29  ;;  %v2118_v6 = vpop.eup %2117  ;;  %v1820_v32 = vadd.f32 %v1819_v22, %v1757_v42  ;;  %v1314_v14 = vadd.f32 1e-06, %v3208_v7 }
 0x1de   :  { %2133 = vlog2.f32 %v1312_v57  ;;  %v2120_v38 = vpop.eup %2119  ;;  %v1507_v13 = vadd.f32 1e-06, %v1059_v15  ;;  %v3217_v20 = vmul.f32 %v2114_v8, %v2731_v33  ;;  %v3220_v41 = vmul.f32 %v2114_v8, %v2741_v46 }
 0x1df   :  { %2135 = vlog2.f32 %v1505_v2  ;;  %v2122_v24 = vpop.eup %2121  ;;  %v1508_v43 = vadd.f32 1e-06, %v1060_v1  ;;  %v1061_v61 = vmul.f32 %v2116_v28, %v2747_v49  ;;  %v1062_v51 = vmul.f32 %v2116_v28, %v2745_v48 }
 0x1e0   :  { %2137 = vlog2.f32 %v1506_v17  ;;  %v1315_v12 = vadd.f32 1e-06, %v3217_v20  ;;  %v3228_v18 = vmul.f32 %v2118_v6, %v2755_v60  ;;  %v3231_v33 = vmul.f32 %v2118_v6, %v2753_v59  ;;  %v2124_v46 = vpop.eup %2123  ;;  %v3240_v59 = vpop.xlane.xlu0 %953 }
 0x1e1   :  { %2139 = vlog2.f32 %v1313_v54  ;;  %v1758_v19 = vmul.f32 %v1694_v21, %v3181_v62  ;;  %v1316_v27 = vadd.f32 1e-06, %v3220_v41  ;;  %v2126_v49 = vpop.eup %2125  ;;  %v1509_v48 = vadd.f32 1e-06, %v1061_v61 }
 0x1e2   :  { %2141 = vlog2.f32 %v1314_v14  ;;  %v1063_v34 = vmul.f32 %v2120_v38, %v2757_v10  ;;  %v1064_v4 = vmul.f32 %v2120_v38, %v2767_v35  ;;  %v1510_v30 = vadd.f32 1e-06, %v1062_v51 }
 0x1e3   :  { %2143 = vlog2.f32 %v1507_v13  ;;  %v3238_v60 = vmul.f32 %v2122_v24, %v2763_v23  ;;  %v1821_v37 = vadd.f32 %v1820_v32, %v1758_v19  ;;  %v1317_v62 = vadd.f32 1e-06, %v3228_v18  ;;  %v1149_v13 = vpop.xlane.xlu1 %1148 }
 0x1e4   :  { %2145 = vlog2.f32 %v1508_v43  ;;  %v1318_v56 = vadd.f32 1e-06, %v3231_v33  ;;  %v1511_v5 = vadd.f32 1e-06, %v1063_v34  ;;  %v3245_v10 = vmul.f32 %v2122_v24, %v2773_v40  ;;  %v3259_v17 = vpop.xlane.xlu0 %956 }
 0x1e5   :  { %v2128_v11 = vpop.eup %2127  ;;  %2147 = vlog2.f32 %v1315_v12  ;;  %v1065_v35 = vmul.f32 %v2124_v46, %v2779_v45  ;;  %v1512_v3 = vadd.f32 1e-06, %v1064_v4  ;;  %v1066_v39 = vmul.f32 %v2124_v46, %v2777_v44  ;;  %v3761_v45 = vld [vmem:[#allocation2_spill] sm:$0xff] }
 0x1e6   :  { %v2130_v9 = vpop.eup %2129  ;;  %2149 = vlog2.f32 %v1316_v27  ;;  %v1576_v50 = vmul.f32 0.6931472, %v2128_v11  ;;  %v1319_v63 = vadd.f32 1e-06, %v3238_v60  ;;  %v3253_v57 = vmul.f32 %v2126_v49, %v2787_v0 }
 0x1e7   :  { %v2132_v23 = vpop.eup %2131  ;;  %2151 = vlog2.f32 %v1509_v48  ;;  %v1578_v52 = vmul.f32 0.6931472, %v2130_v9  ;;  %v3256_v8 = vmul.f32 %v2126_v49, %v3761_v45  ;;  %v1320_v44 = vadd.f32 1e-06, %v3245_v10 }
 0x1e8   :  { %v2134_v22 = vpop.eup %2133  ;;  %v1384_v42 = vmul.f32 0.6931472, %v2132_v23  ;;  %2153 = vlog2.f32 %v1510_v30  ;;  %v1513_v28 = vadd.f32 1e-06, %v1065_v35  ;;  %v1514_v0 = vadd.f32 1e-06, %v1066_v39 }
 0x1e9   :  { %v2136_v40 = vpop.eup %2135  ;;  %v1386_v2 = vmul.f32 0.6931472, %v2134_v22  ;;  %2155 = vlog2.f32 %v1317_v62  ;;  %v1321_v38 = vadd.f32 1e-06, %v3253_v57  ;;  %v1322_v51 = vadd.f32 1e-06, %v3256_v8  ;;  %v960_v62 = vpop.xlane.xlu0 %959 }
 0x1ea   :  { %v2138_v36 = vpop.eup %2137  ;;  %v1695_v15 = vsub.f32 %v1384_v42, %v1576_v50  ;;  %2157 = vlog2.f32 %v1318_v56  ;;  %v1580_v6 = vmul.f32 0.6931472, %v2136_v40  ;;  %v1152_v50 = vpop.xlane.xlu1 %1151 }
 0x1eb   :  { %v2140_v54 = vpop.eup %2139  ;;  %v1696_v1 = vsub.f32 %v1386_v2, %v1578_v52  ;;  %2159 = vlog2.f32 %v1511_v5  ;;  %v1582_v43 = vmul.f32 0.6931472, %v2138_v36 }
 0x1ec   :  { %v2142_v21 = vpop.eup %2141  ;;  %v1759_v32 = vmul.f32 %v1695_v15, %v3194_v26  ;;  %v1388_v14 = vmul.f32 0.6931472, %v2140_v54  ;;  %2161 = vlog2.f32 %v1512_v3 }
 0x1ed   :  { %v2144_v24 = vpop.eup %2143  ;;  %v1390_v61 = vmul.f32 0.6931472, %v2142_v21  ;;  %2163 = vlog2.f32 %v1319_v63  ;;  %v1760_v46 = vmul.f32 %v1696_v1, %v3197_v53 }
 0x1ee   :  { %v2146_v12 = vpop.eup %2145  ;;  %v1822_v19 = vadd.f32 %v1821_v37, %v1759_v32  ;;  %v1697_v27 = vsub.f32 %v1388_v14, %v1580_v6  ;;  %2165 = vlog2.f32 %v1320_v44  ;;  %v1584_v26 = vmul.f32 0.6931472, %v2144_v24 }
 0x1ef   :  { %v2148_v49 = vpop.eup %2147  ;;  %v1698_v48 = vsub.f32 %v1390_v61, %v1582_v43  ;;  %2167 = vlog2.f32 %v1513_v28  ;;  %v1586_v9 = vmul.f32 0.6931472, %v2146_v12 }
 0x1f0   :  { %v2150_v34 = vpop.eup %2149  ;;  %v1823_v4 = vadd.f32 %v1822_v19, %v1760_v46  ;;  %v1761_v30 = vmul.f32 %v1697_v27, %v3205_v29  ;;  %v1392_v11 = vmul.f32 0.6931472, %v2148_v49  ;;  %2169 = vlog2.f32 %v1514_v0 }
 0x1f1   :  { %v2152_v56 = vpop.eup %2151  ;;  %v1394_v5 = vmul.f32 0.6931472, %v2150_v34  ;;  %2171 = vlog2.f32 %v1321_v38  ;;  %v1762_v53 = vmul.f32 %v1698_v48, %v3208_v7  ;;  %v3762_v34 = vld [vmem:[#allocation3_spill] sm:$0xff] }
 0x1f2   :  { %v2154_v35 = vpop.eup %2153  ;;  %v1824_v37 = vadd.f32 %v1823_v4, %v1761_v30  ;;  %v1699_v23 = vsub.f32 %v1392_v11, %v1584_v26  ;;  %2173 = vlog2.f32 %v1322_v51  ;;  %v1588_v22 = vmul.f32 0.6931472, %v2152_v56  ;;  %v3763_v4 = vld [vmem:[#allocation5_spill] sm:$0xff] }
 0x1f3   :  { %v2156_v3 = vpop.eup %2155  ;;  %v1700_v39 = vsub.f32 %v1394_v5, %v1586_v9  ;;  %2175 = vrcp.f32 %v3214_v16  ;;  %v1590_v2 = vmul.f32 0.6931472, %v2154_v35  ;;  %v963_v16 = vpop.xlane.xlu0 %962  ;;  %v3764_v9 = vld [vmem:[#allocation4_spill] sm:$0xff]  ;;  %v3765_v5 = vld [vmem:[#allocation6_spill] sm:$0xff] }
 0x1f4   :  { %v2158_v29 = vpop.eup %2157  ;;  %v1825_v42 = vadd.f32 %v1824_v37, %v1762_v53  ;;  %v1763_v63 = vmul.f32 %v1699_v23, %v3217_v20  ;;  %v1396_v40 = vmul.f32 0.6931472, %v2156_v3  ;;  %2177 = vrcp.f32 %v3224_v55 }
 0x1f5   :  { %v2160_v52 = vpop.eup %2159  ;;  %v1398_v45 = vmul.f32 0.6931472, %v2158_v29  ;;  %2179 = vrcp.f32 %v3240_v59  ;;  %v1764_v36 = vmul.f32 %v1700_v39, %v3220_v41  ;;  %v1155_v59 = vpop.xlane.xlu1 %1154 }
 0x1f6   :  { %v2162_v7 = vpop.eup %2161  ;;  %v1826_v15 = vadd.f32 %v1825_v42, %v1763_v63  ;;  %v1701_v44 = vsub.f32 %v1396_v40, %v1588_v22  ;;  %2181 = vrcp.f32 %v3248_v47  ;;  %v1592_v1 = vmul.f32 0.6931472, %v2160_v52  ;;  %v3766_v42 = vld [vmem:[#allocation8_spill] sm:$0xff]  ;;  %v3767_v52 = vld [vmem:[#allocation7_spill] sm:$0xff] }
 0x1f7   :  { %v2164_v28 = vpop.eup %2163  ;;  %v1702_v54 = vsub.f32 %v1398_v45, %v1590_v2  ;;  %2183 = vrcp.f32 %v3259_v17  ;;  %v1594_v32 = vmul.f32 0.6931472, %v2162_v7  ;;  %v966_v46 = vpop.xlane.xlu0 %965  ;;  %v3768_v45 = vld [vmem:[#allocation10_spill] sm:$0xff] }
 0x1f8   :  { %v2166_v20 = vpop.eup %2165  ;;  %v1827_v55 = vadd.f32 %v1826_v15, %v1764_v36  ;;  %v1765_v6 = vmul.f32 %v1701_v44, %v3228_v18  ;;  %v1400_v0 = vmul.f32 0.6931472, %v2164_v28  ;;  %2185 = vrcp.f32 %v1149_v13  ;;  %v3769_v44 = vld [vmem:[#allocation9_spill] sm:$0xff]  ;;  %v3770_v28 = vld [vmem:[#allocation11_spill] sm:$0xff] }
 0x1f9   :  { %v2168_v21 = vpop.eup %2167  ;;  %v1402_v41 = vmul.f32 0.6931472, %v2166_v20  ;;  %2187 = vrcp.f32 %v960_v62  ;;  %v1766_v47 = vmul.f32 %v1702_v54, %v3231_v33  ;;  %v1158_v11 = vpop.xlane.xlu1 %1157 }
 0x1fa   :  { %v2170_v14 = vpop.eup %2169  ;;  %v1828_v38 = vadd.f32 %v1827_v55, %v1765_v6  ;;  %v1703_v24 = vsub.f32 %v1400_v0, %v1592_v1  ;;  %2189 = vrcp.f32 %v1152_v50  ;;  %v1596_v19 = vmul.f32 0.6931472, %v2168_v21 }
 0x1fb   :  { %v2172_v43 = vpop.eup %2171  ;;  %v1704_v61 = vsub.f32 %v1402_v41, %v1594_v32  ;;  %v1598_v27 = vmul.f32 0.6931472, %v2170_v14  ;;  %2191 = vrcp.f32 %v963_v16  ;;  %v3301_v41 = vpop.xlane.xlu0 %968  ;;  %v3772_v14 = vld [vmem:[#allocation12_spill] sm:$0xff] }
 0x1fc   :  { %v2174_v17 = vpop.eup %2173  ;;  %v1829_v51 = vadd.f32 %v1828_v38, %v1766_v47  ;;  %v1767_v12 = vmul.f32 %v1703_v24, %v3238_v60  ;;  %v1404_v18 = vmul.f32 0.6931472, %v2172_v43  ;;  %2193 = vrcp.f32 %v1155_v59  ;;  %v3771_v59 = vld [vmem:[#allocation13_spill] sm:$0xff]  ;;  %v3773_v38 = vld [vmem:[#allocation14_spill] sm:$0xff] }
 0x1fd   :  { %v2176_v13 = vpop.eup %2175  ;;  %v1406_v49 = vmul.f32 0.6931472, %v2174_v17  ;;  %v1768_v56 = vmul.f32 %v1704_v61, %v3245_v10  ;;  %2195 = vrcp.f32 %v966_v46 }
 0x1fe   :  { %v2178_v48 = vpop.eup %2177  ;;  %v1830_v26 = vadd.f32 %v1829_v51, %v1767_v12  ;;  %v1067_v33 = vmul.f32 %v2176_v13, %v3762_v34  ;;  %v1068_v30 = vmul.f32 %v2176_v13, %v3763_v4  ;;  %v1705_v37 = vsub.f32 %v1404_v18, %v1596_v19  ;;  %v3775_v51 = vld [vmem:[#allocation15_spill] sm:$0xff]  ;;  %v3311_v18 = vpop.xlane.xlu1 %1160 }
 0x1ff   :  { %v2180_v62 = vpop.eup %2179  ;;  %v3281_v60 = vmul.f32 %v2178_v48, %v3764_v9  ;;  %v3284_v35 = vmul.f32 %v2178_v48, %v3765_v5  ;;  %v1706_v23 = vsub.f32 %v1406_v49, %v1598_v27  ;;  %2197 = vrcp.f32 %v1158_v11  ;;  %v3776_v27 = vld [vmem:[#allocation18_spill] sm:$0xff]  ;;  %v3778_v11 = vld [vmem:[#allocation19_spill] sm:$0xff] }
 0x200   :  { %v2182_v53 = vpop.eup %2181  ;;  %v1515_v50 = vadd.f32 1e-06, %v1067_v33  ;;  %v1516_v3 = vadd.f32 1e-06, %v1068_v30  ;;  %v1069_v63 = vmul.f32 %v2180_v62, %v3766_v42  ;;  %v1831_v40 = vadd.f32 %v1830_v26, %v1768_v56  ;;  %v3777_v33 = vld [vmem:[#allocation17_spill] sm:$0xff] }
 0x201   :  { %v2184_v39 = vpop.eup %2183  ;;  %v1323_v22 = vadd.f32 1e-06, %v3281_v60  ;;  %v1324_v29 = vadd.f32 1e-06, %v3284_v35  ;;  %v1070_v2 = vmul.f32 %v2180_v62, %v3767_v52  ;;  %v3291_v7 = vmul.f32 %v2182_v53, %v3768_v45  ;;  %v3779_v56 = vld [vmem:[#allocation21_spill] sm:$0xff] }
 0x202   :  { %v2186_v10 = vpop.eup %2185  ;;  %2199 = vlog2.f32 %v1515_v50  ;;  %v1517_v15 = vadd.f32 1e-06, %v1069_v63  ;;  %v3294_v16 = vmul.f32 %v2182_v53, %v3769_v44  ;;  %v1071_v54 = vmul.f32 %v2184_v39, %v3770_v28  ;;  %v3781_v63 = vld [vmem:[#allocation22_spill] sm:$0xff] }
 0x203   :  { %v2188_v36 = vpop.eup %2187  ;;  %2201 = vlog2.f32 %v1516_v3  ;;  %v1769_v1 = vmul.f32 %v1705_v37, %v3253_v57  ;;  %v1518_v20 = vadd.f32 1e-06, %v1070_v2  ;;  %v1325_v55 = vadd.f32 1e-06, %v3291_v7  ;;  %v3774_v57 = vld [vmem:[#allocation16_spill] sm:$0xff]  ;;  %v3327_v3 = vpop.xlane.xlu0 %971  ;;  %v3784_v28 = vld [vmem:[#allocation26_spill] sm:$0xff] }
 0x204   :  { %2203 = vlog2.f32 %v1323_v22  ;;  %v2190_v6 = vpop.eup %2189  ;;  %v1326_v0 = vadd.f32 1e-06, %v3294_v16  ;;  %v1072_v21 = vmul.f32 %v2184_v39, %v3771_v59  ;;  %v1519_v32 = vadd.f32 1e-06, %v1071_v54  ;;  %v3780_v37 = vld [vmem:[#allocation20_spill] sm:$0xff]  ;;  %v3335_v2 = vpop.xlane.xlu1 %1163 }
 0x205   :  { %2205 = vlog2.f32 %v1324_v29  ;;  %v3304_v47 = vmul.f32 %v2186_v10, %v3772_v14  ;;  %v3307_v24 = vmul.f32 %v2186_v10, %v3773_v38  ;;  %v1073_v43 = vmul.f32 %v2188_v36, %v3774_v57  ;;  %v2192_v61 = vpop.eup %2191 }
 0x206   :  { %2207 = vlog2.f32 %v1517_v15  ;;  %v1520_v17 = vadd.f32 1e-06, %v1072_v21  ;;  %v1074_v12 = vmul.f32 %v2188_v36, %v3775_v51  ;;  %v2194_v46 = vpop.eup %2193  ;;  %v1832_v13 = vadd.f32 %v1831_v40, %v1769_v1  ;;  %v3782_v40 = vld [vmem:[#allocation24_spill] sm:$0xff]  ;;  %v3783_v15 = vld [vmem:[#allocation23_spill] sm:$0xff] }
 0x207   :  { %2209 = vlog2.f32 %v1518_v20  ;;  %v1327_v19 = vadd.f32 1e-06, %v3304_v47  ;;  %v3315_v49 = vmul.f32 %v2190_v6, %v3776_v27  ;;  %v2196_v48 = vpop.eup %2195  ;;  %v1770_v26 = vmul.f32 %v1706_v23, %v3256_v8 }
 0x208   :  { %2211 = vlog2.f32 %v1325_v55  ;;  %v1328_v34 = vadd.f32 1e-06, %v3307_v24  ;;  %v3320_v4 = vmul.f32 %v2190_v6, %v3777_v33  ;;  %v1521_v30 = vadd.f32 1e-06, %v1073_v43 }
 0x209   :  { %2213 = vlog2.f32 %v1326_v0  ;;  %v1075_v62 = vmul.f32 %v2192_v61, %v3778_v11  ;;  %v1076_v9 = vmul.f32 %v2192_v61, %v3779_v56  ;;  %v2198_v5 = vpop.eup %2197  ;;  %v1522_v53 = vadd.f32 1e-06, %v1074_v12 }
 0x20a   :  { %2215 = vlog2.f32 %v1519_v32  ;;  %v3325_v50 = vmul.f32 %v2194_v46, %v3780_v37  ;;  %v1833_v23 = vadd.f32 %v1832_v13, %v1770_v26  ;;  %v1329_v39 = vadd.f32 1e-06, %v3315_v49  ;;  %v3785_v32 = vld [vmem:[#allocation25_spill] sm:$0xff] }
 0x20b   :  { %2217 = vlog2.f32 %v1520_v17  ;;  %v1330_v22 = vadd.f32 1e-06, %v3320_v4  ;;  %v1523_v42 = vadd.f32 1e-06, %v1075_v62  ;;  %v3332_v10 = vmul.f32 %v2194_v46, %v3781_v63  ;;  %v3346_v17 = vpop.xlane.xlu0 %974 }
 0x20c   :  { %v2200_v8 = vpop.eup %2199  ;;  %2219 = vlog2.f32 %v1327_v19  ;;  %v1077_v52 = vmul.f32 %v2196_v48, %v3782_v40  ;;  %v1524_v36 = vadd.f32 1e-06, %v1076_v9  ;;  %v1078_v44 = vmul.f32 %v2196_v48, %v3783_v15 }
 0x20d   :  { %v2202_v29 = vpop.eup %2201  ;;  %2221 = vlog2.f32 %v1328_v34  ;;  %v3339_v54 = vmul.f32 %v2198_v5, %v3784_v28  ;;  %v1600_v20 = vmul.f32 0.6931472, %v2200_v8  ;;  %v1331_v6 = vadd.f32 1e-06, %v3325_v50  ;;  %v1167_v34 = vpop.xlane.xlu1 %1166 }
 0x20e   :  { %v2204_v45 = vpop.eup %2203  ;;  %2223 = vlog2.f32 %v1521_v30  ;;  %v1602_v59 = vmul.f32 0.6931472, %v2202_v29  ;;  %v3343_v14 = vmul.f32 %v2198_v5, %v3785_v32  ;;  %v1332_v43 = vadd.f32 1e-06, %v3332_v10 }
 0x20f   :  { %v2206_v1 = vpop.eup %2205  ;;  %v1408_v55 = vmul.f32 0.6931472, %v2204_v45  ;;  %2225 = vlog2.f32 %v1522_v53  ;;  %v1525_v61 = vadd.f32 1e-06, %v1077_v52  ;;  %v1526_v46 = vadd.f32 1e-06, %v1078_v44  ;;  %v978_v63 = vpop.xlane.xlu0 %977 }
 0x210   :  { %v2208_v0 = vpop.eup %2207  ;;  %v1410_v21 = vmul.f32 0.6931472, %v2206_v1  ;;  %2227 = vlog2.f32 %v1329_v39  ;;  %v1333_v13 = vadd.f32 1e-06, %v3339_v54  ;;  %v1334_v62 = vadd.f32 1e-06, %v3343_v14 }
 0x211   :  { %v2210_v38 = vpop.eup %2209  ;;  %v1707_v57 = vsub.f32 %v1408_v55, %v1600_v20  ;;  %2229 = vlog2.f32 %v1330_v22  ;;  %v1604_v48 = vmul.f32 0.6931472, %v2208_v0  ;;  %v1170_v44 = vpop.xlane.xlu1 %1169 }
 0x212   :  { %v2212_v51 = vpop.eup %2211  ;;  %v1708_v12 = vsub.f32 %v1410_v21, %v1602_v59  ;;  %2231 = vlog2.f32 %v1523_v42  ;;  %v1606_v30 = vmul.f32 0.6931472, %v2210_v38 }
 0x213   :  { %v2214_v19 = vpop.eup %2213  ;;  %v1771_v27 = vmul.f32 %v1707_v57, %v3281_v60  ;;  %v1412_v26 = vmul.f32 0.6931472, %v2212_v51  ;;  %2233 = vlog2.f32 %v1524_v36 }
 0x214   :  { %v2216_v33 = vpop.eup %2215  ;;  %v1414_v11 = vmul.f32 0.6931472, %v2214_v19  ;;  %2235 = vlog2.f32 %v1331_v6  ;;  %v1772_v9 = vmul.f32 %v1708_v12, %v3284_v35 }
 0x215   :  { %v2218_v56 = vpop.eup %2217  ;;  %v1834_v5 = vadd.f32 %v1833_v23, %v1771_v27  ;;  %v1709_v53 = vsub.f32 %v1412_v26, %v1604_v48  ;;  %2237 = vlog2.f32 %v1332_v43  ;;  %v1608_v39 = vmul.f32 0.6931472, %v2216_v33 }
 0x216   :  { %v2220_v37 = vpop.eup %2219  ;;  %v1710_v8 = vsub.f32 %v1414_v11, %v1606_v30  ;;  %2239 = vlog2.f32 %v1525_v61  ;;  %v1610_v52 = vmul.f32 0.6931472, %v2218_v56 }
 0x217   :  { %v2222_v60 = vpop.eup %2221  ;;  %v1835_v22 = vadd.f32 %v1834_v5, %v1772_v9  ;;  %v1773_v29 = vmul.f32 %v1709_v53, %v3291_v7  ;;  %v1416_v42 = vmul.f32 0.6931472, %v2220_v37  ;;  %2241 = vlog2.f32 %v1526_v46 }
 0x218   :  { %v2224_v40 = vpop.eup %2223  ;;  %v1418_v45 = vmul.f32 0.6931472, %v2222_v60  ;;  %2243 = vlog2.f32 %v1333_v13  ;;  %v1774_v35 = vmul.f32 %v1710_v8, %v3294_v16  ;;  %v3786_v60 = vld [vmem:[#allocation27_spill] sm:$0xff] }
 0x219   :  { %v2226_v36 = vpop.eup %2225  ;;  %v1836_v23 = vadd.f32 %v1835_v22, %v1773_v29  ;;  %v1711_v15 = vsub.f32 %v1416_v42, %v1608_v39  ;;  %2245 = vlog2.f32 %v1334_v62  ;;  %v1612_v20 = vmul.f32 0.6931472, %v2224_v40  ;;  %v3787_v22 = vld [vmem:[#allocation29_spill] sm:$0xff] }
 0x21a   :  { %v2228_v28 = vpop.eup %2227  ;;  %v1712_v1 = vsub.f32 %v1418_v45, %v1610_v52  ;;  %2247 = vrcp.f32 %v3301_v41  ;;  %v1614_v21 = vmul.f32 0.6931472, %v2226_v36  ;;  %v981_v41 = vpop.xlane.xlu0 %980  ;;  %v3788_v52 = vld [vmem:[#allocation28_spill] sm:$0xff]  ;;  %v3789_v45 = vld [vmem:[#allocation30_spill] sm:$0xff] }
 0x21b   :  { %v2230_v7 = vpop.eup %2229  ;;  %v1837_v55 = vadd.f32 %v1836_v23, %v1774_v35  ;;  %v1775_v6 = vmul.f32 %v1711_v15, %v3304_v47  ;;  %v1420_v0 = vmul.f32 0.6931472, %v2228_v28  ;;  %2249 = vrcp.f32 %v3311_v18 }
 0x21c   :  { %v2232_v59 = vpop.eup %2231  ;;  %v1422_v32 = vmul.f32 0.6931472, %v2230_v7  ;;  %2251 = vrcp.f32 %v3327_v3  ;;  %v1776_v38 = vmul.f32 %v1712_v1, %v3307_v24  ;;  %v1173_v3 = vpop.xlane.xlu1 %1172 }
 0x21d   :  { %v2234_v16 = vpop.eup %2233  ;;  %v1838_v57 = vadd.f32 %v1837_v55, %v1775_v6  ;;  %v1713_v43 = vsub.f32 %v1420_v0, %v1612_v20  ;;  %2253 = vrcp.f32 %v3335_v2  ;;  %v1616_v12 = vmul.f32 0.6931472, %v2232_v59  ;;  %v3790_v55 = vld [vmem:[#allocation32_spill] sm:$0xff]  ;;  %v3791_v59 = vld [vmem:[#allocation31_spill] sm:$0xff] }
 0x21e   :  { %v2236_v61 = vpop.eup %2235  ;;  %v1714_v51 = vsub.f32 %v1422_v32, %v1614_v21  ;;  %2255 = vrcp.f32 %v3346_v17  ;;  %v1618_v27 = vmul.f32 0.6931472, %v2234_v16  ;;  %v984_v9 = vpop.xlane.xlu0 %983  ;;  %v3792_v32 = vld [vmem:[#allocation34_spill] sm:$0xff] }
 0x21f   :  { %v2238_v47 = vpop.eup %2237  ;;  %v1839_v18 = vadd.f32 %v1838_v57, %v1776_v38  ;;  %v1777_v46 = vmul.f32 %v1713_v43, %v3315_v49  ;;  %v1424_v13 = vmul.f32 0.6931472, %v2236_v61  ;;  %2257 = vrcp.f32 %v1167_v34  ;;  %v3793_v43 = vld [vmem:[#allocation33_spill] sm:$0xff]  ;;  %v3794_v61 = vld [vmem:[#allocation35_spill] sm:$0xff] }
 0x220   :  { %v2240_v19 = vpop.eup %2239  ;;  %v1426_v24 = vmul.f32 0.6931472, %v2238_v47  ;;  %2259 = vrcp.f32 %v978_v63  ;;  %v1778_v2 = vmul.f32 %v1714_v51, %v3320_v4  ;;  %v1176_v42 = vpop.xlane.xlu1 %1175 }
 0x221   :  { %v2242_v48 = vpop.eup %2241  ;;  %v1840_v26 = vadd.f32 %v1839_v18, %v1777_v46  ;;  %v1715_v33 = vsub.f32 %v1424_v13, %v1616_v12  ;;  %2261 = vrcp.f32 %v1170_v44  ;;  %v1620_v5 = vmul.f32 0.6931472, %v2240_v19 }
 0x222   :  { %v2244_v30 = vpop.eup %2243  ;;  %v1716_v11 = vsub.f32 %v1426_v24, %v1618_v27  ;;  %v1622_v53 = vmul.f32 0.6931472, %v2242_v48  ;;  %2263 = vrcp.f32 %v981_v41  ;;  %v3388_v24 = vpop.xlane.xlu0 %986  ;;  %v3796_v48 = vld [vmem:[#allocation36_spill] sm:$0xff] }
 0x223   :  { %v2246_v17 = vpop.eup %2245  ;;  %v1841_v62 = vadd.f32 %v1840_v26, %v1778_v2  ;;  %v1779_v56 = vmul.f32 %v1715_v33, %v3325_v50  ;;  %v1428_v49 = vmul.f32 0.6931472, %v2244_v30  ;;  %2265 = vrcp.f32 %v1173_v3  ;;  %v3795_v3 = vld [vmem:[#allocation37_spill] sm:$0xff]  ;;  %v3797_v26 = vld [vmem:[#allocation38_spill] sm:$0xff] }
 0x224   :  { %v2248_v34 = vpop.eup %2247  ;;  %v1430_v37 = vmul.f32 0.6931472, %v2246_v17  ;;  %v1780_v40 = vmul.f32 %v1716_v11, %v3332_v10  ;;  %2267 = vrcp.f32 %v984_v9 }
 0x225   :  { %v2250_v8 = vpop.eup %2249  ;;  %v1842_v39 = vadd.f32 %v1841_v62, %v1779_v56  ;;  %v1079_v4 = vmul.f32 %v2248_v34, %v3786_v60  ;;  %v1080_v29 = vmul.f32 %v2248_v34, %v3787_v22  ;;  %v1717_v23 = vsub.f32 %v1428_v49, %v1620_v5  ;;  %v3799_v62 = vld [vmem:[#allocation39_spill] sm:$0xff]  ;;  %v3398_v49 = vpop.xlane.xlu1 %1178 }
 0x226   :  { %v2252_v63 = vpop.eup %2251  ;;  %v3368_v50 = vmul.f32 %v2250_v8, %v3788_v52  ;;  %v3371_v36 = vmul.f32 %v2250_v8, %v3789_v45  ;;  %v1718_v15 = vsub.f32 %v1430_v37, %v1622_v53  ;;  %2269 = vrcp.f32 %v1176_v42  ;;  %v3800_v53 = vld [vmem:[#allocation42_spill] sm:$0xff]  ;;  %v3802_v42 = vld [vmem:[#allocation43_spill] sm:$0xff] }
 0x227   :  { %v2254_v35 = vpop.eup %2253  ;;  %v1527_v44 = vadd.f32 1e-06, %v1079_v4  ;;  %v1528_v28 = vadd.f32 1e-06, %v1080_v29  ;;  %v1081_v6 = vmul.f32 %v2252_v63, %v3790_v55  ;;  %v1843_v0 = vadd.f32 %v1842_v39, %v1780_v40  ;;  %v3801_v4 = vld [vmem:[#allocation41_spill] sm:$0xff] }
 0x228   :  { %v2256_v1 = vpop.eup %2255  ;;  %v1335_v20 = vadd.f32 1e-06, %v3368_v50  ;;  %v1336_v7 = vadd.f32 1e-06, %v3371_v36  ;;  %v1082_v21 = vmul.f32 %v2252_v63, %v3791_v59  ;;  %v3378_v16 = vmul.f32 %v2254_v35, %v3792_v32  ;;  %v3803_v40 = vld [vmem:[#allocation45_spill] sm:$0xff] }
 0x229   :  { %v2258_v10 = vpop.eup %2257  ;;  %2271 = vlog2.f32 %v1527_v44  ;;  %v1529_v57 = vadd.f32 1e-06, %v1081_v6  ;;  %v3381_v41 = vmul.f32 %v2254_v35, %v3793_v43  ;;  %v1083_v51 = vmul.f32 %v2256_v1, %v3794_v61  ;;  %v3805_v6 = vld [vmem:[#allocation46_spill] sm:$0xff] }
 0x22a   :  { %v2260_v38 = vpop.eup %2259  ;;  %2273 = vlog2.f32 %v1528_v28  ;;  %v1781_v12 = vmul.f32 %v1717_v23, %v3339_v54  ;;  %v1530_v47 = vadd.f32 1e-06, %v1082_v21  ;;  %v1337_v18 = vadd.f32 1e-06, %v3378_v16  ;;  %v3798_v54 = vld [vmem:[#allocation40_spill] sm:$0xff]  ;;  %v3414_v28 = vpop.xlane.xlu0 %989  ;;  %v3808_v61 = vld [vmem:[#allocation50_spill] sm:$0xff] }
 0x22b   :  { %2275 = vlog2.f32 %v1335_v20  ;;  %v2262_v46 = vpop.eup %2261  ;;  %v1338_v13 = vadd.f32 1e-06, %v3381_v41  ;;  %v1084_v19 = vmul.f32 %v2256_v1, %v3795_v3  ;;  %v1531_v27 = vadd.f32 1e-06, %v1083_v51  ;;  %v3804_v23 = vld [vmem:[#allocation44_spill] sm:$0xff]  ;;  %v3422_v21 = vpop.xlane.xlu1 %1181 }
 0x22c   :  { %2277 = vlog2.f32 %v1336_v7  ;;  %v3391_v2 = vmul.f32 %v2258_v10, %v3796_v48  ;;  %v3394_v33 = vmul.f32 %v2258_v10, %v3797_v26  ;;  %v1085_v30 = vmul.f32 %v2260_v38, %v3798_v54  ;;  %v2264_v11 = vpop.eup %2263 }
 0x22d   :  { %2279 = vlog2.f32 %v1529_v57  ;;  %v1532_v17 = vadd.f32 1e-06, %v1084_v19  ;;  %v1086_v56 = vmul.f32 %v2260_v38, %v3799_v62  ;;  %v2266_v9 = vpop.eup %2265  ;;  %v1844_v34 = vadd.f32 %v1843_v0, %v1781_v12  ;;  %v3806_v0 = vld [vmem:[#allocation48_spill] sm:$0xff]  ;;  %v3807_v57 = vld [vmem:[#allocation47_spill] sm:$0xff] }
 0x22e   :  { %2281 = vlog2.f32 %v1530_v47  ;;  %v1339_v5 = vadd.f32 1e-06, %v3391_v2  ;;  %v3402_v37 = vmul.f32 %v2262_v46, %v3800_v53  ;;  %v2268_v8 = vpop.eup %2267  ;;  %v1782_v39 = vmul.f32 %v1718_v15, %v3343_v14 }
 0x22f   :  { %2283 = vlog2.f32 %v1337_v18  ;;  %v1340_v60 = vadd.f32 1e-06, %v3394_v33  ;;  %v3407_v22 = vmul.f32 %v2262_v46, %v3801_v4  ;;  %v1533_v29 = vadd.f32 1e-06, %v1085_v30 }
 0x230   :  { %2285 = vlog2.f32 %v1338_v13  ;;  %v1087_v63 = vmul.f32 %v2264_v11, %v3802_v42  ;;  %v1088_v52 = vmul.f32 %v2264_v11, %v3803_v40  ;;  %v2270_v45 = vpop.eup %2269  ;;  %v1534_v35 = vadd.f32 1e-06, %v1086_v56 }
 0x231   :  { %2287 = vlog2.f32 %v1531_v27  ;;  %v3412_v44 = vmul.f32 %v2266_v9, %v3804_v23  ;;  %v1845_v15 = vadd.f32 %v1844_v34, %v1782_v39  ;;  %v1341_v1 = vadd.f32 1e-06, %v3402_v37  ;;  %v3809_v27 = vld [vmem:[#allocation49_spill] sm:$0xff] }
 0x232   :  { %2289 = vlog2.f32 %v1532_v17  ;;  %v1342_v20 = vadd.f32 1e-06, %v3407_v22  ;;  %v1535_v55 = vadd.f32 1e-06, %v1087_v63  ;;  %v3419_v10 = vmul.f32 %v2266_v9, %v3805_v6  ;;  %v3433_v17 = vpop.xlane.xlu0 %992 }
 0x233   :  { %v2272_v14 = vpop.eup %2271  ;;  %2291 = vlog2.f32 %v1339_v5  ;;  %v1089_v59 = vmul.f32 %v2268_v8, %v3806_v0  ;;  %v1536_v38 = vadd.f32 1e-06, %v1088_v52  ;;  %v1090_v43 = vmul.f32 %v2268_v8, %v3807_v57 }
 0x234   :  { %v2274_v7 = vpop.eup %2273  ;;  %2293 = vlog2.f32 %v1340_v60  ;;  %v3426_v51 = vmul.f32 %v2270_v45, %v3808_v61  ;;  %v1624_v47 = vmul.f32 0.6931472, %v2272_v14  ;;  %v1343_v46 = vadd.f32 1e-06, %v3412_v44  ;;  %v1185_v60 = vpop.xlane.xlu1 %1184 }
 0x235   :  { %v2276_v32 = vpop.eup %2275  ;;  %2295 = vlog2.f32 %v1533_v29  ;;  %v1626_v3 = vmul.f32 0.6931472, %v2274_v7  ;;  %v3430_v48 = vmul.f32 %v2270_v45, %v3809_v27  ;;  %v1344_v30 = vadd.f32 1e-06, %v3419_v10 }
 0x236   :  { %v2278_v12 = vpop.eup %2277  ;;  %v1432_v18 = vmul.f32 0.6931472, %v2276_v32  ;;  %2297 = vlog2.f32 %v1534_v35  ;;  %v1537_v11 = vadd.f32 1e-06, %v1089_v59  ;;  %v1538_v9 = vadd.f32 1e-06, %v1090_v43  ;;  %v996_v6 = vpop.xlane.xlu0 %995 }
 0x237   :  { %v2280_v13 = vpop.eup %2279  ;;  %v1434_v19 = vmul.f32 0.6931472, %v2278_v12  ;;  %2299 = vlog2.f32 %v1341_v1  ;;  %v1345_v34 = vadd.f32 1e-06, %v3426_v51  ;;  %v1346_v63 = vadd.f32 1e-06, %v3430_v48 }
 0x238   :  { %v2282_v26 = vpop.eup %2281  ;;  %v1719_v54 = vsub.f32 %v1432_v18, %v1624_v47  ;;  %2301 = vlog2.f32 %v1342_v20  ;;  %v1628_v8 = vmul.f32 0.6931472, %v2280_v13  ;;  %v1188_v43 = vpop.xlane.xlu1 %1187 }
 0x239   :  { %v2284_v62 = vpop.eup %2283  ;;  %v1720_v56 = vsub.f32 %v1434_v19, %v1626_v3  ;;  %2303 = vlog2.f32 %v1535_v55  ;;  %v1630_v29 = vmul.f32 0.6931472, %v2282_v26 }
 0x23a   :  { %v2286_v5 = vpop.eup %2285  ;;  %v1783_v53 = vmul.f32 %v1719_v54, %v3368_v50  ;;  %v1436_v39 = vmul.f32 0.6931472, %v2284_v62  ;;  %2305 = vlog2.f32 %v1536_v38 }
 0x23b   :  { %v2288_v4 = vpop.eup %2287  ;;  %v1438_v42 = vmul.f32 0.6931472, %v2286_v5  ;;  %2307 = vlog2.f32 %v1343_v46  ;;  %v1784_v52 = vmul.f32 %v1720_v56, %v3371_v36 }
 0x23c   :  { %v2290_v40 = vpop.eup %2289  ;;  %v1846_v45 = vadd.f32 %v1845_v15, %v1783_v53  ;;  %v1721_v35 = vsub.f32 %v1436_v39, %v1628_v8  ;;  %2309 = vlog2.f32 %v1344_v30  ;;  %v1632_v1 = vmul.f32 0.6931472, %v2288_v4 }
 0x23d   :  { %v2292_v23 = vpop.eup %2291  ;;  %v1722_v14 = vsub.f32 %v1438_v42, %v1630_v29  ;;  %2311 = vlog2.f32 %v1537_v11  ;;  %v1634_v59 = vmul.f32 0.6931472, %v2290_v40 }
 0x23e   :  { %v2294_v50 = vpop.eup %2293  ;;  %v1847_v20 = vadd.f32 %v1846_v45, %v1784_v52  ;;  %v1785_v7 = vmul.f32 %v1721_v35, %v3378_v16  ;;  %v1440_v55 = vmul.f32 0.6931472, %v2292_v23  ;;  %2313 = vlog2.f32 %v1538_v9 }
 0x23f   :  { %v2296_v0 = vpop.eup %2295  ;;  %v1442_v32 = vmul.f32 0.6931472, %v2294_v50  ;;  %2315 = vlog2.f32 %v1345_v34  ;;  %v1786_v36 = vmul.f32 %v1722_v14, %v3381_v41  ;;  %v3810_v50 = vld [vmem:[#allocation51_spill] sm:$0xff] }
 0x240   :  { %v2298_v38 = vpop.eup %2297  ;;  %v1848_v15 = vadd.f32 %v1847_v20, %v1785_v7  ;;  %v1723_v57 = vsub.f32 %v1440_v55, %v1632_v1  ;;  %2317 = vlog2.f32 %v1346_v63  ;;  %v1636_v47 = vmul.f32 0.6931472, %v2296_v0  ;;  %v3811_v20 = vld [vmem:[#allocation53_spill] sm:$0xff] }
 0x241   :  { %v2300_v61 = vpop.eup %2299  ;;  %v1724_v12 = vsub.f32 %v1442_v32, %v1634_v59  ;;  %2319 = vrcp.f32 %v3388_v24  ;;  %v1638_v19 = vmul.f32 0.6931472, %v2298_v38  ;;  %v999_v24 = vpop.xlane.xlu0 %998  ;;  %v3812_v59 = vld [vmem:[#allocation52_spill] sm:$0xff]  ;;  %v3813_v32 = vld [vmem:[#allocation54_spill] sm:$0xff] }
 0x242   :  { %v2302_v16 = vpop.eup %2301  ;;  %v1849_v18 = vadd.f32 %v1848_v15, %v1786_v36  ;;  %v1787_v46 = vmul.f32 %v1723_v57, %v3391_v2  ;;  %v1444_v13 = vmul.f32 0.6931472, %v2300_v61  ;;  %2321 = vrcp.f32 %v3398_v49 }
 0x243   :  { %v2304_v3 = vpop.eup %2303  ;;  %v1446_v27 = vmul.f32 0.6931472, %v2302_v16  ;;  %2323 = vrcp.f32 %v3414_v28  ;;  %v1788_v26 = vmul.f32 %v1724_v12, %v3394_v33  ;;  %v1191_v28 = vpop.xlane.xlu1 %1190 }
 0x244   :  { %v2306_v41 = vpop.eup %2305  ;;  %v1850_v54 = vadd.f32 %v1849_v18, %v1787_v46  ;;  %v1725_v30 = vsub.f32 %v1444_v13, %v1636_v47  ;;  %2325 = vrcp.f32 %v3422_v21  ;;  %v1640_v56 = vmul.f32 0.6931472, %v2304_v3  ;;  %v3814_v18 = vld [vmem:[#allocation56_spill] sm:$0xff]  ;;  %v3815_v3 = vld [vmem:[#allocation55_spill] sm:$0xff] }
 0x245   :  { %v2308_v11 = vpop.eup %2307  ;;  %v1726_v62 = vsub.f32 %v1446_v27, %v1638_v19  ;;  %2327 = vrcp.f32 %v3433_v17  ;;  %v1642_v53 = vmul.f32 0.6931472, %v2306_v41  ;;  %v1002_v52 = vpop.xlane.xlu0 %1001  ;;  %v3816_v27 = vld [vmem:[#allocation58_spill] sm:$0xff] }
 0x246   :  { %v2310_v2 = vpop.eup %2309  ;;  %v1851_v49 = vadd.f32 %v1850_v54, %v1788_v26  ;;  %v1789_v9 = vmul.f32 %v1725_v30, %v3402_v37  ;;  %v1448_v34 = vmul.f32 0.6931472, %v2308_v11  ;;  %2329 = vrcp.f32 %v1185_v60  ;;  %v3817_v30 = vld [vmem:[#allocation57_spill] sm:$0xff]  ;;  %v3818_v11 = vld [vmem:[#allocation59_spill] sm:$0xff] }
 0x247   :  { %v2312_v5 = vpop.eup %2311  ;;  %v1450_v33 = vmul.f32 0.6931472, %v2310_v2  ;;  %2331 = vrcp.f32 %v996_v6  ;;  %v1790_v21 = vmul.f32 %v1726_v62, %v3407_v22  ;;  %v1194_v55 = vpop.xlane.xlu1 %1193 }
 0x248   :  { %v2314_v8 = vpop.eup %2313  ;;  %v1852_v39 = vadd.f32 %v1851_v49, %v1789_v9  ;;  %v1727_v4 = vsub.f32 %v1448_v34, %v1640_v56  ;;  %2333 = vrcp.f32 %v1188_v43  ;;  %v1644_v45 = vmul.f32 0.6931472, %v2312_v5 }
 0x249   :  { %v2316_v29 = vpop.eup %2315  ;;  %v1728_v42 = vsub.f32 %v1450_v33, %v1642_v53  ;;  %v1646_v35 = vmul.f32 0.6931472, %v2314_v8  ;;  %2335 = vrcp.f32 %v999_v24  ;;  %v3820_v33 = vld [vmem:[#allocation60_spill] sm:$0xff] }
 0x24a   :  { %v2318_v17 = vpop.eup %2317  ;;  %v1853_v63 = vadd.f32 %v1852_v39, %v1790_v21  ;;  %v1791_v40 = vmul.f32 %v1727_v4, %v3412_v44  ;;  %v1452_v37 = vmul.f32 0.6931472, %v2316_v29  ;;  %2337 = vrcp.f32 %v1191_v28  ;;  %v3819_v28 = vld [vmem:[#allocation61_spill] sm:$0xff]  ;;  %v3821_v21 = vld [vmem:[#allocation62_spill] sm:$0xff]  ;;  %v3822_v4 = vld [vmem:[#allocation64_spill] sm:$0xff] }
 0x24b   :  { %v2320_v60 = vpop.eup %2319  ;;  %v1454_v23 = vmul.f32 0.6931472, %v2318_v17  ;;  %v1792_v0 = vmul.f32 %v1728_v42, %v3419_v10  ;;  %2339 = vrcp.f32 %v1002_v52  ;;  %v3823_v17 = vld [vmem:[#allocation63_spill] sm:$0xff] }
 0x24c   :  { %v2322_v14 = vpop.eup %2321  ;;  %v1854_v1 = vadd.f32 %v1853_v63, %v1791_v40  ;;  %v1091_v22 = vmul.f32 %v2320_v60, %v3810_v50  ;;  %v1092_v7 = vmul.f32 %v2320_v60, %v3811_v20  ;;  %v1729_v15 = vsub.f32 %v1452_v37, %v1644_v45  ;;  %v3824_v60 = vld [vmem:[#allocation66_spill] sm:$0xff]  ;;  %v3826_v20 = vld [vmem:[#allocation67_spill] sm:$0xff] }
 0x24d   :  { %v2324_v6 = vpop.eup %2323  ;;  %v3455_v44 = vmul.f32 %v2322_v14, %v3812_v59  ;;  %v3458_v38 = vmul.f32 %v2322_v14, %v3813_v32  ;;  %v1730_v57 = vsub.f32 %v1454_v23, %v1646_v35  ;;  %2341 = vrcp.f32 %v1194_v55  ;;  %v3827_v55 = vld [vmem:[#allocation69_spill] sm:$0xff]  ;;  %v3828_v32 = vld [vmem:[#allocation68_spill] sm:$0xff] }
 0x24e   :  { %v2326_v36 = vpop.eup %2325  ;;  %v1539_v43 = vadd.f32 1e-06, %v1091_v22  ;;  %v1540_v61 = vadd.f32 1e-06, %v1092_v7  ;;  %v1093_v46 = vmul.f32 %v2324_v6, %v3814_v18  ;;  %v1855_v13 = vadd.f32 %v1854_v1, %v1792_v0  ;;  %v3825_v1 = vld [vmem:[#allocation65_spill] sm:$0xff] }
 0x24f   :  { %v2328_v12 = vpop.eup %2327  ;;  %v1347_v47 = vadd.f32 1e-06, %v3455_v44  ;;  %v1348_v16 = vadd.f32 1e-06, %v3458_v38  ;;  %v1094_v19 = vmul.f32 %v2324_v6, %v3815_v3  ;;  %v3465_v41 = vmul.f32 %v2326_v36, %v3816_v27  ;;  %v3831_v27 = vld [vmem:[#allocation71_spill] sm:$0xff] }
 0x250   :  { %v2330_v10 = vpop.eup %2329  ;;  %2343 = vlog2.f32 %v1539_v43  ;;  %v1541_v54 = vadd.f32 1e-06, %v1093_v46  ;;  %v3468_v24 = vmul.f32 %v2326_v36, %v3817_v30  ;;  %v1095_v62 = vmul.f32 %v2328_v12, %v3818_v11  ;;  %v3830_v46 = vld [vmem:[#allocation72_spill] sm:$0xff] }
 0x251   :  { %v2332_v26 = vpop.eup %2331  ;;  %2345 = vlog2.f32 %v1540_v61  ;;  %v1793_v56 = vmul.f32 %v1729_v15, %v3426_v51  ;;  %v1542_v2 = vadd.f32 1e-06, %v1094_v19  ;;  %v1349_v49 = vadd.f32 1e-06, %v3465_v41  ;;  %v3499_v61 = vpop.xlane.xlu1 %1196 }
 0x252   :  { %2347 = vlog2.f32 %v1347_v47  ;;  %v2334_v9 = vpop.eup %2333  ;;  %v1350_v34 = vadd.f32 1e-06, %v3468_v24  ;;  %v1096_v5 = vmul.f32 %v2328_v12, %v3819_v28  ;;  %v1543_v53 = vadd.f32 1e-06, %v1095_v62  ;;  %v3833_v28 = vld [vmem:[#allocation73_spill] sm:$0xff] }
 0x253   :  { %2349 = vlog2.f32 %v1348_v16  ;;  %v3476_v8 = vmul.f32 %v2330_v10, %v3820_v33  ;;  %v3479_v39 = vmul.f32 %v2330_v10, %v3821_v21  ;;  %v1097_v51 = vmul.f32 %v2332_v26, %v3822_v4  ;;  %v2336_v29 = vpop.eup %2335  ;;  %v3829_v16 = vld [vmem:[#allocation70_spill] sm:$0xff] }
 0x254   :  { %2351 = vlog2.f32 %v1541_v54  ;;  %v1544_v42 = vadd.f32 1e-06, %v1096_v5  ;;  %v1098_v63 = vmul.f32 %v2332_v26, %v3823_v17  ;;  %v2338_v40 = vpop.eup %2337  ;;  %v1856_v37 = vadd.f32 %v1855_v13, %v1793_v56  ;;  %v3505_v13 = vpop.xlane.xlu0 %1004  ;;  %v3832_v54 = vld [vmem:[#allocation74_spill] sm:$0xff] }
 0x255   :  { %2353 = vlog2.f32 %v1542_v2  ;;  %v1351_v52 = vadd.f32 1e-06, %v3476_v8  ;;  %v3485_v45 = vmul.f32 %v2334_v9, %v3824_v60  ;;  %v2340_v35 = vpop.eup %2339  ;;  %v1794_v23 = vmul.f32 %v1730_v57, %v3430_v48 }
 0x256   :  { %2355 = vlog2.f32 %v1349_v49  ;;  %v1352_v14 = vadd.f32 1e-06, %v3479_v39  ;;  %v3490_v50 = vmul.f32 %v2334_v9, %v3825_v1  ;;  %v1545_v22 = vadd.f32 1e-06, %v1097_v51 }
 0x257   :  { %2357 = vlog2.f32 %v1350_v34  ;;  %v1099_v7 = vmul.f32 %v2336_v29, %v3826_v20  ;;  %v1100_v6 = vmul.f32 %v2336_v29, %v3827_v55  ;;  %v2342_v0 = vpop.eup %2341  ;;  %v1546_v59 = vadd.f32 1e-06, %v1098_v63  ;;  %v1200_v63 = vpop.xlane.xlu1 %1199 }
 0x258   :  { %2359 = vlog2.f32 %v1543_v53  ;;  %v3495_v36 = vmul.f32 %v2338_v40, %v3828_v32  ;;  %v1857_v48 = vadd.f32 %v1856_v37, %v1794_v23  ;;  %v1353_v57 = vadd.f32 1e-06, %v3485_v45 }
 0x259   :  { %2361 = vlog2.f32 %v1544_v42  ;;  %v1354_v43 = vadd.f32 1e-06, %v3490_v50  ;;  %v1547_v47 = vadd.f32 1e-06, %v1099_v7  ;;  %v3502_v18 = vmul.f32 %v2338_v40, %v3829_v16 }
 0x25a   :  { %v2344_v15 = vpop.eup %2343  ;;  %2363 = vlog2.f32 %v1351_v52  ;;  %v1101_v10 = vmul.f32 %v2340_v35, %v3830_v46  ;;  %v1548_v19 = vadd.f32 1e-06, %v1100_v6  ;;  %v1102_v26 = vmul.f32 %v2340_v35, %v3831_v27  ;;  %v1008_v35 = vpop.xlane.xlu0 %1007 }
 0x25b   :  { %v2346_v12 = vpop.eup %2345  ;;  %2365 = vlog2.f32 %v1352_v14  ;;  %v3509_v30 = vmul.f32 %v2342_v0, %v3832_v54  ;;  %v1648_v62 = vmul.f32 0.6931472, %v2344_v15  ;;  %v1355_v2 = vadd.f32 1e-06, %v3495_v36  ;;  %v1203_v46 = vpop.xlane.xlu1 %1202 }
 0x25c   :  { %v2348_v3 = vpop.eup %2347  ;;  %2367 = vlog2.f32 %v1545_v22  ;;  %v1650_v9 = vmul.f32 0.6931472, %v2346_v12  ;;  %v3513_v5 = vmul.f32 %v2342_v0, %v3833_v28  ;;  %v1356_v21 = vadd.f32 1e-06, %v3502_v18 }
 0x25d   :  { %v2350_v11 = vpop.eup %2349  ;;  %v1456_v56 = vmul.f32 0.6931472, %v2348_v3  ;;  %2369 = vlog2.f32 %v1546_v59  ;;  %v1549_v4 = vadd.f32 1e-06, %v1101_v10  ;;  %v1550_v42 = vadd.f32 1e-06, %v1102_v26 }
 0x25e   :  { %v2352_v49 = vpop.eup %2351  ;;  %v1458_v34 = vmul.f32 0.6931472, %v2350_v11  ;;  %2371 = vlog2.f32 %v1353_v57  ;;  %v1357_v17 = vadd.f32 1e-06, %v3509_v30  ;;  %v1358_v22 = vadd.f32 1e-06, %v3513_v5 }
 0x25f   :  { %v2354_v53 = vpop.eup %2353  ;;  %v1731_v33 = vsub.f32 %v1456_v56, %v1648_v62  ;;  %2373 = vlog2.f32 %v1354_v43  ;;  %v1652_v52 = vmul.f32 0.6931472, %v2352_v49 }
 0x260   :  { %v2356_v51 = vpop.eup %2355  ;;  %v1732_v29 = vsub.f32 %v1458_v34, %v1650_v9  ;;  %2375 = vlog2.f32 %v1547_v47  ;;  %v1654_v14 = vmul.f32 0.6931472, %v2354_v53 }
 0x261   :  { %v2358_v40 = vpop.eup %2357  ;;  %v1795_v37 = vmul.f32 %v1731_v33, %v3455_v44  ;;  %v1460_v60 = vmul.f32 0.6931472, %v2356_v51  ;;  %2377 = vlog2.f32 %v1548_v19  ;;  %v1011_v19 = vpop.xlane.xlu0 %1010 }
 0x262   :  { %v2360_v23 = vpop.eup %2359  ;;  %v1462_v1 = vmul.f32 0.6931472, %v2358_v40  ;;  %2379 = vlog2.f32 %v1355_v2  ;;  %v1796_v7 = vmul.f32 %v1732_v29, %v3458_v38 }
 0x263   :  { %v2362_v20 = vpop.eup %2361  ;;  %v1858_v55 = vadd.f32 %v1857_v48, %v1795_v37  ;;  %v1733_v6 = vsub.f32 %v1460_v60, %v1652_v52  ;;  %2381 = vlog2.f32 %v1356_v21  ;;  %v1656_v32 = vmul.f32 0.6931472, %v2360_v23 }
 0x264   :  { %v2364_v0 = vpop.eup %2363  ;;  %v1734_v59 = vsub.f32 %v1462_v1, %v1654_v14  ;;  %2383 = vlog2.f32 %v1549_v4  ;;  %v1658_v47 = vmul.f32 0.6931472, %v2362_v20 }
 0x265   :  { %v2366_v44 = vpop.eup %2365  ;;  %v1859_v15 = vadd.f32 %v1858_v55, %v1796_v7  ;;  %v1797_v57 = vmul.f32 %v1733_v6, %v3465_v41  ;;  %v1464_v43 = vmul.f32 0.6931472, %v2364_v0  ;;  %2385 = vlog2.f32 %v1550_v42  ;;  %v1014_v42 = vpop.xlane.xlu0 %1013  ;;  %v3834_v7 = vld [vmem:[#allocation75_spill] sm:$0xff]  ;;  %v3835_v6 = vld [vmem:[#allocation77_spill] sm:$0xff] }
 0x266   :  { %v2368_v12 = vpop.eup %2367  ;;  %v1466_v16 = vmul.f32 0.6931472, %v2366_v44  ;;  %2387 = vlog2.f32 %v1357_v17  ;;  %v1798_v38 = vmul.f32 %v1734_v59, %v3468_v24 }
 0x267   :  { %v2370_v10 = vpop.eup %2369  ;;  %v1860_v48 = vadd.f32 %v1859_v15, %v1797_v57  ;;  %v1735_v3 = vsub.f32 %v1464_v43, %v1656_v32  ;;  %2389 = vlog2.f32 %v1358_v22  ;;  %v1660_v54 = vmul.f32 0.6931472, %v2368_v12  ;;  %v3836_v15 = vld [vmem:[#allocation76_spill] sm:$0xff]  ;;  %v3837_v43 = vld [vmem:[#allocation78_spill] sm:$0xff] }
 0x268   :  { %v2372_v27 = vpop.eup %2371  ;;  %v1736_v26 = vsub.f32 %v1466_v16, %v1658_v47  ;;  %2391 = vrcp.f32 %v3505_v13  ;;  %v1662_v49 = vmul.f32 0.6931472, %v2370_v10  ;;  %v1206_v13 = vpop.xlane.xlu1 %1205 }
 0x269   :  { %v2374_v41 = vpop.eup %2373  ;;  %v1861_v11 = vadd.f32 %v1860_v48, %v1798_v38  ;;  %v1799_v62 = vmul.f32 %v1735_v3, %v3476_v8  ;;  %v1468_v56 = vmul.f32 0.6931472, %v2372_v27  ;;  %2393 = vrcp.f32 %v3499_v61 }
 0x26a   :  { %v2376_v2 = vpop.eup %2375  ;;  %v1470_v9 = vmul.f32 0.6931472, %v2374_v41  ;;  %2395 = vrcp.f32 %v1008_v35  ;;  %v1800_v34 = vmul.f32 %v1736_v26, %v3479_v39 }
 0x26b   :  { %v2378_v24 = vpop.eup %2377  ;;  %v1862_v28 = vadd.f32 %v1861_v11, %v1799_v62  ;;  %v1737_v53 = vsub.f32 %v1468_v56, %v1660_v54  ;;  %2397 = vrcp.f32 %v1200_v63  ;;  %v1664_v21 = vmul.f32 0.6931472, %v2376_v2  ;;  %v3838_v11 = vld [vmem:[#allocation79_spill] sm:$0xff] }
 0x26c   :  { %v2380_v33 = vpop.eup %2379  ;;  %2399 = vrcp.f32 %v1011_v19  ;;  %v1738_v8 = vsub.f32 %v1470_v9, %v1662_v49  ;;  %v1666_v63 = vmul.f32 0.6931472, %v2378_v24 }
 0x26d   :  { %v2382_v4 = vpop.eup %2381  ;;  %v1863_v51 = vadd.f32 %v1862_v28, %v1800_v34  ;;  %v1801_v29 = vmul.f32 %v1737_v53, %v3485_v45  ;;  %v1472_v61 = vmul.f32 0.6931472, %v2380_v33  ;;  %2401 = vrcp.f32 %v1203_v46 }
 0x26e   :  { %v2384_v17 = vpop.eup %2383  ;;  %v1474_v40 = vmul.f32 0.6931472, %v2382_v4  ;;  %2403 = vrcp.f32 %v1206_v13  ;;  %v1802_v23 = vmul.f32 %v1738_v8, %v3490_v50 }
 0x26f   :  { %v2386_v37 = vpop.eup %2385  ;;  %v1864_v52 = vadd.f32 %v1863_v51, %v1801_v29  ;;  %v1739_v39 = vsub.f32 %v1472_v61, %v1664_v21  ;;  %2405 = vrcp.f32 %v1014_v42  ;;  %v1668_v32 = vmul.f32 0.6931472, %v2384_v17  ;;  %v3841_v21 = vld [vmem:[#allocation81_spill] sm:$0xff]  ;;  %v3842_v51 = vld [vmem:[#allocation83_spill] sm:$0xff] }
 0x270   :  { %v2388_v60 = vpop.eup %2387  ;;  %v1740_v1 = vsub.f32 %v1474_v40, %v1666_v63  ;;  %v3531_v44 = vmul.f32 0.6931472, %v2386_v37  ;;  %v3843_v29 = vld [vmem:[#allocation87_spill] sm:$0xff]  ;;  %v3844_v42 = vld [vmem:[#allocation85_spill] sm:$0xff]  ;;  %v3845_v40 = vld [vmem:[#allocation86_spill] sm:$0xff] }
 0x271   :  { %v2390_v35 = vpop.eup %2389  ;;  %v1865_v20 = vadd.f32 %v1864_v52, %v1802_v23  ;;  %v1803_v45 = vmul.f32 %v1739_v39, %v3495_v36  ;;  %v1476_v47 = vmul.f32 0.6931472, %v2388_v60  ;;  %v3846_v60 = vld [vmem:[#allocation84_spill] sm:$0xff] }
 0x272   :  { %v2392_v14 = vpop.eup %2391  ;;  %v1804_v36 = vmul.f32 %v1740_v1, %v3502_v18  ;;  %v3839_v18 = vld [vmem:[#allocation80_spill] sm:$0xff]  ;;  %v1478_v49 = vmul.f32 0.6931472, %v2390_v35 }
 0x273   :  { %v2394_v22 = vpop.eup %2393  ;;  %v1103_v55 = vmul.f32 %v2392_v14, %v3834_v7  ;;  %v1104_v0 = vmul.f32 %v2392_v14, %v3835_v6  ;;  %v1866_v19 = vadd.f32 %v1865_v20, %v1803_v45  ;;  %v1741_v34 = vsub.f32 %v1476_v47, %v1668_v32 }
 0x274   :  { %v2396_v59 = vpop.eup %2395  ;;  %v3534_v57 = vmul.f32 %v2394_v22, %v3836_v15  ;;  %v3537_v12 = vmul.f32 %v2394_v22, %v3837_v43  ;;  %v1742_v14 = vsub.f32 %v1478_v49, %v3531_v44 }
 0x275   :  { %v2398_v50 = vpop.eup %2397  ;;  %v1551_v16 = vadd.f32 1e-06, %v1103_v55  ;;  %v1552_v46 = vadd.f32 1e-06, %v1104_v0  ;;  %v1105_v3 = vmul.f32 %v2396_v59, %v3099_v25  ;;  %v1106_v27 = vmul.f32 %v2396_v59, %v3097_v58 }
 0x276   :  { %v2400_v10 = vpop.eup %2399  ;;  %v1359_v38 = vadd.f32 1e-06, %v3534_v57  ;;  %v1360_v48 = vadd.f32 1e-06, %v3537_v12  ;;  %v3545_v26 = vmul.f32 %v2398_v50, %v3107_v31  ;;  %v3548_v62 = vmul.f32 %v2398_v50, %v3838_v11  ;;  %v3840_v31 = vld [vmem:[#allocation82_spill] sm:$0xff] }
 0x277   :  { %2407 = vlog2.f32 %v1551_v16  ;;  %v2402_v54 = vpop.eup %2401  ;;  %v1553_v41 = vadd.f32 1e-06, %v1105_v3  ;;  %v1107_v56 = vmul.f32 %v2400_v10, %v3839_v18  ;;  %v1554_v9 = vadd.f32 1e-06, %v1106_v27 }
 0x278   :  { %2409 = vlog2.f32 %v1552_v46  ;;  %v2404_v2 = vpop.eup %2403  ;;  %v1361_v25 = vadd.f32 1e-06, %v3545_v26  ;;  %v1362_v58 = vadd.f32 1e-06, %v3548_v62  ;;  %v1108_v28 = vmul.f32 %v2400_v10, %v3840_v31 }
 0x279   :  { %2411 = vlog2.f32 %v1359_v38  ;;  %v2406_v24 = vpop.eup %2405  ;;  %v1867_v53 = vadd.f32 %v1866_v19, %v1804_v36  ;;  %v1555_v33 = vadd.f32 1e-06, %v1107_v56  ;;  %v3555_v13 = vmul.f32 %v2402_v54, %v3841_v21 }
 0x27a   :  { %2413 = vlog2.f32 %v1360_v48  ;;  %v1556_v4 = vadd.f32 1e-06, %v1108_v28  ;;  %v3558_v8 = vmul.f32 %v2402_v54, %v3842_v51  ;;  %v3561_v61 = vmul.f32 %v2404_v2, %v3843_v29 }
 0x27b   :  { %2415 = vlog2.f32 %v1553_v41  ;;  %v1109_v17 = vmul.f32 %v2406_v24, %v3844_v42  ;;  %v3565_v37 = vmul.f32 %v2404_v2, %v3845_v40  ;;  %v1363_v52 = vadd.f32 1e-06, %v3555_v13 }
 0x27c   :  { %2417 = vlog2.f32 %v1554_v9  ;;  %v1805_v39 = vmul.f32 %v1741_v34, %v3509_v30  ;;  %v1110_v63 = vmul.f32 %v2406_v24, %v3846_v60  ;;  %v1364_v35 = vadd.f32 1e-06, %v3558_v8 }
 0x27d   :  { %2419 = vlog2.f32 %v1361_v25  ;;  %v1365_v23 = vadd.f32 1e-06, %v3561_v61  ;;  %v1366_v1 = vadd.f32 1e-06, %v3565_v37  ;;  %v1557_v20 = vadd.f32 1e-06, %v1109_v17 }
 0x27e   :  { %2421 = vlog2.f32 %v1362_v58  ;;  %v1868_v7 = vadd.f32 %v1867_v53, %v1805_v39  ;;  %v1558_v30 = vadd.f32 1e-06, %v1110_v63  ;;  %v1806_v0 = vmul.f32 %v1742_v14, %v3513_v5 }
 0x27f   :  { %2423 = vlog2.f32 %v1555_v33 }
 0x280   :  { %2425 = vlog2.f32 %v1556_v4  ;;  %v1869_v47 = vadd.f32 %v1868_v7, %v1806_v0 }
 0x281   :  { %v2408_v22 = vpop.eup %2407  ;;  %2427 = vlog2.f32 %v1363_v52 }
 0x282   :  { %v2410_v45 = vpop.eup %2409  ;;  %2429 = vlog2.f32 %v1364_v35  ;;  %v1672_v59 = vmul.f32 0.6931472, %v2408_v22 }
 0x283   :  { %v2412_v55 = vpop.eup %2411  ;;  %2431 = vlog2.f32 %v1365_v23  ;;  %v1674_v44 = vmul.f32 0.6931472, %v2410_v45 }
 0x284   :  { %v2414_v6 = vpop.eup %2413  ;;  %v1480_v32 = vmul.f32 0.6931472, %v2412_v55  ;;  %2433 = vlog2.f32 %v1366_v1 }
 0x285   :  { %v2416_v15 = vpop.eup %2415  ;;  %v1482_v43 = vmul.f32 0.6931472, %v2414_v6  ;;  %2435 = vlog2.f32 %v1557_v20 }
 0x286   :  { %v2418_v50 = vpop.eup %2417  ;;  %v1743_v16 = vsub.f32 %v1480_v32, %v1672_v59  ;;  %2437 = vlog2.f32 %v1558_v30  ;;  %v1676_v48 = vmul.f32 0.6931472, %v2416_v15 }
 0x287   :  { %v2420_v46 = vpop.eup %2419  ;;  %v1744_v10 = vsub.f32 %v1482_v43, %v1674_v44  ;;  %v1678_v5 = vmul.f32 0.6931472, %v2418_v50 }
 0x288   :  { %v2422_v36 = vpop.eup %2421  ;;  %v1807_v38 = vmul.f32 %v1743_v16, %v3534_v57  ;;  %v1484_v3 = vmul.f32 0.6931472, %v2420_v46 }
 0x289   :  { %v2424_v19 = vpop.eup %2423  ;;  %v1486_v27 = vmul.f32 0.6931472, %v2422_v36  ;;  %v1808_v41 = vmul.f32 %v1744_v10, %v3537_v12 }
 0x28a   :  { %v2426_v54 = vpop.eup %2425  ;;  %v1745_v11 = vsub.f32 %v1484_v3, %v1676_v48  ;;  %v1870_v18 = vadd.f32 %v1869_v47, %v1807_v38  ;;  %v1680_v25 = vmul.f32 0.6931472, %v2424_v19 }
 0x28b   :  { %v2428_v56 = vpop.eup %2427  ;;  %v1746_v2 = vsub.f32 %v1486_v27, %v1678_v5  ;;  %v1682_v31 = vmul.f32 0.6931472, %v2426_v54 }
 0x28c   :  { %v2430_v49 = vpop.eup %2429  ;;  %v1488_v9 = vmul.f32 0.6931472, %v2428_v56  ;;  %v1809_v24 = vmul.f32 %v1745_v11, %v3545_v26  ;;  %v1871_v34 = vadd.f32 %v1870_v18, %v1808_v41 }
 0x28d   :  { %v2432_v58 = vpop.eup %2431  ;;  %v1490_v57 = vmul.f32 0.6931472, %v2430_v49  ;;  %v1810_v21 = vmul.f32 %v1746_v2, %v3548_v62 }
 0x28e   :  { %v2434_v28 = vpop.eup %2433  ;;  %v1492_v53 = vmul.f32 0.6931472, %v2432_v58  ;;  %v1747_v33 = vsub.f32 %v1488_v9, %v1680_v25  ;;  %v1872_v4 = vadd.f32 %v1871_v34, %v1809_v24 }
 0x28f   :  { %v2436_v12 = vpop.eup %2435  ;;  %v1494_v51 = vmul.f32 0.6931472, %v2434_v28  ;;  %v1748_v29 = vsub.f32 %v1490_v57, %v1682_v31 }
 0x290   :  { %v2438_v42 = vpop.eup %2437  ;;  %v1684_v17 = vmul.f32 0.6931472, %v2436_v12  ;;  %v1811_v40 = vmul.f32 %v1747_v33, %v3555_v13  ;;  %v1873_v52 = vadd.f32 %v1872_v4, %v1810_v21 }
 0x291   :  { %v1686_v39 = vmul.f32 0.6931472, %v2438_v42  ;;  %v1812_v60 = vmul.f32 %v1748_v29, %v3558_v8 }
 0x292   :  { %v1749_v26 = vsub.f32 %v1492_v53, %v1684_v17  ;;  %v1874_v63 = vadd.f32 %v1873_v52, %v1811_v40 }
 0x293   :  { %v1750_v35 = vsub.f32 %v1494_v51, %v1686_v39 }
 0x294   :  { %v1813_v23 = vmul.f32 %v1749_v26, %v3561_v61  ;;  %v1875_v14 = vadd.f32 %v1874_v63, %v1812_v60 }
 0x295   :  { %v1814_v62 = vmul.f32 %v1750_v35, %v3565_v37 }
 0x296   :  { %v1876_v1 = vadd.f32 %v1875_v14, %v1813_v23 }
 0x298   :  { %v1877_v22 = vadd.f32 %v1876_v1, %v1814_v62 }
 0x29a   :  { %1878 = vadd.xlane.f32.xlu0 %v1877_v22 }
 0x327   :  { %v1879_v20 = vpop.xlane.xlu0 %1878 }
 0x328   :  { %v1880_v45 = vrot.slane %v1879_v20, 4 }
 0x32a   :  { %v1881_v7 = vadd.f32 %v1880_v45, %v1879_v20 }
 0x32c   :  { %v1882_v30 = vrot.slane %v1881_v7, 2 }
 0x32e   :  { %v1883_v13 = vadd.f32 %v1882_v30, %v1881_v7 }
 0x330   :  { %v1884_v55 = vrot.slane %v1883_v13, 1 }
 0x332   :  { %v1885_v6 = vadd.f32 %v1884_v55, %v1883_v13 }
 0x334   :  { %2021 = vpush %v1885_v6 }
 0x365   :  { %s2022_s0 = spop %2021 }
 0x366   :  { %v1887_v8 = vstv %s2022_s0 }
 0x367   :  { %1888 = vst [vmem:[%s3588_s2] sm:$0xff] %v1887_v8 }

</bundles_post_ra>
